<compile_context>
chip_gen: v5e
topology: v5e:2x2
jax: 0.10.0
libtpu: 0.0.40
codegen_flags: <defaults>
</compile_context>

<pallas_src>
import functools
import math

import jax
import jax.numpy as jnp
from jax.experimental import pallas as pl
from jax.experimental.pallas import tpu as pltpu

D_MODEL = 256
FF_DIM = 512
N_HEADS_TRANS = 8
NEG_INF = -1e30

_VMEM = pl.BlockSpec(memory_space=pltpu.MemorySpace.VMEM)


def _round_up(x, m):
    return ((x + m - 1) // m) * m


def _pcall(kernel, out_shape, *args, scratch_shapes=()):
    """Single-invocation pallas_call with all operands resident in VMEM."""
    multi = isinstance(out_shape, (tuple, list))
    out_shape_t = tuple(out_shape) if multi else out_shape
    out_specs = tuple(_VMEM for _ in out_shape_t) if multi else _VMEM
    return pl.pallas_call(
        kernel,
        out_shape=out_shape_t,
        in_specs=[_VMEM] * len(args),
        out_specs=out_specs,
        scratch_shapes=list(scratch_shapes),
    )(*args)


# ----------------------------------------------------------------- kernels


def _elu(x):
    # alpha = 1.0 (PyTorch default)
    return jnp.where(x > 0.0, x, jnp.exp(jnp.minimum(x, 0.0)) - 1.0)


def _omic_encoder_kernel(om_ref, w1_ref, b1_ref, w2_ref, b2_ref,
                         wq_ref, bq_ref, g_ref, q_ref, *, n_omics):
    """All omic encoders (Linear+ELU, Linear+ELU) + scaled co-attn query projection."""
    g_ref[...] = jnp.zeros(g_ref.shape, g_ref.dtype)          # pad rows stay exactly 0
    for i in range(n_omics):                                   # static unrolled loop
        x = om_ref[i:i + 1, :]                                 # (1, pad_in)
        h = jnp.dot(x, w1_ref[i], preferred_element_type=jnp.float32) + b1_ref[i]
        h = _elu(h)
        h = jnp.dot(h, w2_ref[i], preferred_element_type=jnp.float32) + b2_ref[i]
        h = _elu(h)
        g_ref[i:i + 1, :] = h
    # co-attention query (scale 1/sqrt(256) pre-folded into wq/bq)
    q_ref[...] = jnp.dot(g_ref[...], wq_ref[...],
                         preferred_element_type=jnp.float32) + bq_ref[...]


def _coattn_kernel(q_ref, wsi_ref, hw_ref, hb_ref, wk_ref, bk_ref,
                   wv_ref, bv_ref,
                   s_ref, m_ref, l_ref, acc_ref,
                   *, tile, n_keys, tiles_per_split):
    """Streamed WSI embedding + single-head co-attention with flash (online) softmax.

    Grid = (n_splits['parallel'], tiles_per_split['arbitrary']).  Per-split running
    (m, l, acc) live in the resident output blocks; a separate combine kernel merges them.
    The ragged tail (and any phantom tile past the last real tile) is masked in-kernel.
    """
    s_id = pl.program_id(0)
    k_id = pl.program_id(1)
    kk = s_id * tiles_per_split + k_id            # global (unclamped) tile id

    @pl.when(k_id == 0)
    def _():
        m_ref[...] = jnp.full(m_ref.shape, NEG_INF, m_ref.dtype)
        l_ref[...] = jnp.zeros(l_ref.shape, l_ref.dtype)
        acc_ref[...] = jnp.zeros(acc_ref.shape, acc_ref.dtype)

    # wsi tile -> H -> K, V   (bf16 operands, f32 accumulation on the MXU)
    wsi = wsi_ref[...]
    if wsi.dtype != jnp.bfloat16:                 # trace-time branch; producer supplies bf16
        wsi = wsi.astype(jnp.bfloat16)
    h = jnp.dot(wsi, hw_ref[...], preferred_element_type=jnp.float32) + hb_ref[...]
    h = jnp.maximum(h, 0.0)                       # ReLU
    h16 = h.astype(jnp.bfloat16)
    k = (jnp.dot(h16, wk_ref[...], preferred_element_type=jnp.float32)
         + bk_ref[...]).astype(jnp.bfloat16)
    v = jnp.dot(h16, wv_ref[...], preferred_element_type=jnp.float32) + bv_ref[...]
    # zero V rows of the ragged / phantom tail so garbage never poisons P@V
    row_idx = jax.lax.broadcasted_iota(jnp.int32, v.shape, 0) + kk * tile
    v = jnp.where(row_idx < n_keys, v, 0.0).astype(jnp.bfloat16)

    q = q_ref[...].astype(jnp.bfloat16)           # (Lq, 256), pre-scaled by 1/sqrt(d)
    s = jax.lax.dot_general(q, k, (((1,), (1,)), ((), ())),
                            preferred_element_type=jnp.float32)   # (Lq, tile)
    col = jax.lax.broadcasted_iota(jnp.int32, s.shape, 1) + kk * tile
    s = jnp.where(col < n_keys, s, NEG_INF)
    s_ref[...] = s                                # raw (scaled) logits out

    # flash-softmax update (per-split accumulators resident in the output blocks)
    m_prev = m_ref[0]
    m_new = jnp.maximum(m_prev, jnp.max(s, axis=-1, keepdims=True))
    alpha = jnp.exp(m_prev - m_new)
    p = jnp.exp(s - m_new)
    l_ref[0] = alpha * l_ref[0] + jnp.sum(p, axis=-1, keepdims=True)
    acc_ref[0] = alpha * acc_ref[0] + jnp.dot(p.astype(jnp.bfloat16), v,
                                              preferred_element_type=jnp.float32)
    m_ref[0] = m_new


def _coattn_combine_kernel(m_ref, l_ref, acc_ref, wo_ref, bo_ref, hco_ref, *, n_q):
    """Merge per-split flash partials, normalize, apply out-projection."""
    m = m_ref[...]                                       # (S, L, 1)
    m_g = jnp.max(m, axis=0, keepdims=True)              # (1, L, 1)
    w = jnp.exp(m - m_g)                                 # (S, L, 1)
    l_tot = jnp.sum(w * l_ref[...], axis=0)              # (L, 1)
    acc_tot = jnp.sum(w * acc_ref[...], axis=0)          # (L, D)
    co = acc_tot / l_tot                                 # exact division (parity)
    out = jnp.dot(co, wo_ref[...], preferred_element_type=jnp.float32) + bo_ref[...]
    row = jax.lax.broadcasted_iota(jnp.int32, out.shape, 0)
    hco_ref[...] = jnp.where(row < n_q, out, 0.0)        # zero pad query rows


def _fused_encoder_kernel(x_ref, wqkv_ref, bqkv_ref, wo_ref, bo_ref,
                          g1_ref, be1_ref, w1_ref, b1_ref, w2_ref, b2_ref,
                          g2_ref, be2_ref, o_ref, xbuf,
                          *, num_heads, n_real, layers_per_seq):
    """One grid step = one fused nn.TransformerEncoderLayer (post-norm, ReLU FFN).

    Grid iterates over stacked layers [path0, path1, omic0, omic1]; the running sequence
    is carried in the `xbuf` scratch (reloaded from the input only on the first layer of
    each modality).  Weight DMA for layer i+1 is pipelined behind layer i's compute.
    """
    lid = pl.program_id(0)

    @pl.when(lid % layers_per_seq == 0)
    def _():
        xbuf[...] = x_ref[0]

    x = xbuf[...]                                 # (L, E)
    l, e = x.shape
    hd = e // num_heads
    qkv = jnp.dot(x, wqkv_ref[0], preferred_element_type=jnp.float32) + bqkv_ref[0]
    q = qkv[:, :e]                                # 1/sqrt(hd) folded into the Q block
    k = qkv[:, e:2 * e]
    v = qkv[:, 2 * e:]

    key_mask = jnp.where(
        jax.lax.broadcasted_iota(jnp.int32, (l, l), 1) < n_real, 0.0, NEG_INF)

    heads = []
    for hh in range(num_heads):
        qh = q[:, hh * hd:(hh + 1) * hd]
        kh = k[:, hh * hd:(hh + 1) * hd]
        vh = v[:, hh * hd:(hh + 1) * hd]
        sc = jax.lax.dot_general(qh, kh, (((1,), (1,)), ((), ())),
                                 preferred_element_type=jnp.float32) + key_mask
        sc = sc - jnp.max(sc, axis=-1, keepdims=True)
        p = jnp.exp(sc)
        p = p / jnp.sum(p, axis=-1, keepdims=True)          # exact division
        heads.append(jnp.dot(p, vh, preferred_element_type=jnp.float32))
    attn_cat = jnp.concatenate(heads, axis=1)               # one lane concat, no scratch stores
    attn = jnp.dot(attn_cat, wo_ref[0], preferred_element_type=jnp.float32) + bo_ref[0]

    def _ln(t, g, b):
        mu = jnp.mean(t, axis=-1, keepdims=True)
        var = jnp.mean((t - mu) * (t - mu), axis=-1, keepdims=True)
        return (t - mu) * jax.lax.rsqrt(var + 1e-5) * g + b

    h1 = _ln(x + attn, g1_ref[0], be1_ref[0])
    f = jnp.maximum(jnp.dot(h1, w1_ref[0], preferred_element_type=jnp.float32)
                    + b1_ref[0], 0.0)
    f = jnp.dot(f, w2_ref[0], preferred_element_type=jnp.float32) + b2_ref[0]
    h2 = _ln(h1 + f, g2_ref[0], be2_ref[0])
    row = jax.lax.broadcasted_iota(jnp.int32, h2.shape, 0)
    out = jnp.where(row < n_real, h2, 0.0)                  # keep pad rows at 0
    xbuf[...] = out
    o_ref[0] = out


def _tail_kernel(xp_ref, xo_ref,
                 pwa, pba, pwb, pbb, pwc, pbc, prw, prb,
                 owa, oba, owb, obb, owc, obc, orw, orb,
                 fw1, fb1, fw2, fb2, cw, cb,
                 logits_ref, ap_ref, ao_ref, *, n_real):
    """Gated-attention pooling + rho (both modalities) + fusion MLP + classifier, fused."""

    def pooled_branch(x, wa, ba, wb, bb, wc, bc, rw, rb, a_ref):
        a = jnp.tanh(jnp.dot(x, wa[...], preferred_element_type=jnp.float32) + ba[...])
        b = jax.nn.sigmoid(jnp.dot(x, wb[...], preferred_element_type=jnp.float32) + bb[...])
        att = jnp.dot(a * b, wc[...], preferred_element_type=jnp.float32) + bc[...]   # (L,1)
        a_ref[...] = att
        rows = jax.lax.broadcasted_iota(jnp.int32, att.shape, 0)
        am = jnp.where(rows < n_real, att, NEG_INF)
        am = am - jnp.max(am, axis=0, keepdims=True)
        ex = jnp.exp(am)
        w = ex / jnp.sum(ex, axis=0, keepdims=True)                                   # exact
        pooled = jnp.sum(w * x, axis=0, keepdims=True)                                # (1,E)
        return jnp.maximum(
            jnp.dot(pooled, rw[...], preferred_element_type=jnp.float32) + rb[...], 0.0)

    hp = pooled_branch(xp_ref[...], pwa, pba, pwb, pbb, pwc, pbc, prw, prb, ap_ref)
    ho = pooled_branch(xo_ref[...], owa, oba, owb, obb, owc, obc, orw, orb, ao_ref)

    w1 = fw1[...]
    e = hp.shape[1]
    # concat([hp, ho]) @ fw1 without a lane concatenate
    h = (jnp.dot(hp, w1[:e, :], preferred_element_type=jnp.float32)
         + jnp.dot(ho, w1[e:, :], preferred_element_type=jnp.float32) + fb1[...])
    h = jnp.maximum(h, 0.0)
    h = jnp.maximum(jnp.dot(h, fw2[...], preferred_element_type=jnp.float32) + fb2[...], 0.0)
    logits_ref[...] = jnp.dot(h, cw[...], preferred_element_type=jnp.float32) + cb[...]


# ------------------------------------------------------------ kernel wrappers


def _coattn_wsi(q_pad, wsi, h_w, h_b, cp, n_omics, l_pad):
    n, d_in = wsi.shape
    tile = min(1024, _round_up(max(n, 1), 128))     # big tile; un-padded bag, ragged tail masked
    total_tiles = pl.cdiv(n, tile)
    n_splits = 2 if total_tiles >= 2 else 1         # use both TCs on v7x via 'parallel' axis
    tps = pl.cdiv(total_tiles, n_splits)
    last_tile = total_tiles - 1
    width = n_splits * tps * tile

    kern = functools.partial(_coattn_kernel, tile=tile, n_keys=n, tiles_per_split=tps)
    bcast = lambda s, k: (0, 0)
    per_split = lambda s, k: (s, 0, 0)
    grid_spec = pltpu.PrefetchScalarGridSpec(
        num_scalar_prefetch=0,
        grid=(n_splits, tps),
        in_specs=[
            pl.BlockSpec((l_pad, D_MODEL), bcast),                  # q (pre-scaled)
            pl.BlockSpec((tile, d_in),
                         lambda s, k: (jnp.minimum(s * tps + k, last_tile), 0)),  # wsi tile
            pl.BlockSpec((d_in, D_MODEL), bcast),                   # H_w   (bf16)
            pl.BlockSpec((1, D_MODEL), bcast),                      # H_b
            pl.BlockSpec((D_MODEL, D_MODEL), bcast),                # wk    (bf16)
            pl.BlockSpec((1, D_MODEL), bcast),                      # bk
            pl.BlockSpec((D_MODEL, D_MODEL), bcast),                # wv    (bf16)
            pl.BlockSpec((1, D_MODEL), bcast),                      # bv
        ],
        out_specs=[
            pl.BlockSpec((l_pad, tile), lambda s, k: (0, s * tps + k)),   # raw logits
            pl.BlockSpec((1, l_pad, 1), per_split),                       # running max
            pl.BlockSpec((1, l_pad, 1), per_split),                       # running denom
            pl.BlockSpec((1, l_pad, D_MODEL), per_split),                 # running numerator
        ],
    )
    scores, m_s, l_s, acc_s = pl.pallas_call(
        kern,
        out_shape=(jax.ShapeDtypeStruct((l_pad, width), jnp.float32),
                   jax.ShapeDtypeStruct((n_splits, l_pad, 1), jnp.float32),
                   jax.ShapeDtypeStruct((n_splits, l_pad, 1), jnp.float32),
                   jax.ShapeDtypeStruct((n_splits, l_pad, D_MODEL), jnp.float32)),
        grid_spec=grid_spec,
        compiler_params=pltpu.CompilerParams(
            dimension_semantics=("parallel", "arbitrary"),
            vmem_limit_bytes=32 * 1024 * 1024,
        ),
    )(q_pad, wsi, h_w, h_b, cp["wk"], cp["bk"], cp["wv"], cp["bv"])

    # tiny split-flash combine + out-projection
    h_co = _pcall(
        functools.partial(_coattn_combine_kernel, n_q=n_omics),
        jax.ShapeDtypeStruct((l_pad, D_MODEL), jnp.float32),
        m_s, l_s, acc_s, cp["wo"], cp["bo"])
    return scores, h_co


_ENC_KEYS = ["w_qkv", "b_qkv", "wo", "bo", "ln1_g", "ln1_b",
             "w1", "b1", "w2", "b2", "ln2_g", "ln2_b"]


def _run_transformers(h_coattn, g_pad, enc, n_real):
    """All 4 transformer-encoder layers (2 path + 2 omic) in ONE pipelined pallas_call."""
    l_pad, d = h_coattn.shape
    x_stacked = jnp.stack([h_coattn, g_pad], axis=0)            # (2, l_pad, 256)
    n_layers_total = enc["w_qkv"].shape[0]                       # 4
    lps = n_layers_total // 2                                     # layers per modality

    def wspec(a):
        return pl.BlockSpec((1,) + tuple(a.shape[1:]),
                            lambda i: (i,) + (0,) * (a.ndim - 1))

    in_specs = [pl.BlockSpec((1, l_pad, d), lambda i: (i // lps, 0, 0))]
    args = [x_stacked]
    for key in _ENC_KEYS:
        a = enc[key]
        in_specs.append(wspec(a))
        args.append(a)

    kern = functools.partial(_fused_encoder_kernel, num_heads=N_HEADS_TRANS,
                             n_real=n_real, layers_per_seq=lps)
    out = pl.pallas_call(
        kern,
        out_shape=jax.ShapeDtypeStruct((2, l_pad, d), jnp.float32),
        grid_spec=pltpu.PrefetchScalarGridSpec(
            num_scalar_prefetch=0,
            grid=(n_layers_total,),
            in_specs=in_specs,
            out_specs=pl.BlockSpec((1, l_pad, d), lambda i: (i // lps, 0, 0)),
            scratch_shapes=[pltpu.VMEM((l_pad, d), jnp.float32)]),
        compiler_params=pltpu.CompilerParams(
            dimension_semantics=("arbitrary",)),
    )(*args)
    return out[0], out[1]


# ----------------------------------------------------------------- forward


def forward(params, wsi, omics):
    n_omics = len(omics)
    l_pad = _round_up(max(n_omics, 1), 8)          # pad sequence to a full sublane
    op = params["omic_enc"]
    cp = params["coattn"]
    pad_in = op["w1"].shape[1]
    n_patches = wsi.shape[0]

    # pad + stack omic vectors (tiny glue)
    om_stack = jnp.concatenate(
        [jnp.pad(o.astype(jnp.float32), ((0, 0), (0, pad_in - o.shape[1])))
         for o in omics], axis=0)

    # 1) fused omic encoders + scaled co-attention query projection
    g_pad, q_pad = _pcall(
        functools.partial(_omic_encoder_kernel, n_omics=n_omics),
        (jax.ShapeDtypeStruct((l_pad, D_MODEL), jnp.float32),
         jax.ShapeDtypeStruct((l_pad, D_MODEL), jnp.float32)),
        om_stack, op["w1"], op["b1"], op["w2"], op["b2"],
        cp["wq_s"], cp["bq_s"])

    # 2) grid-tiled WSI embedding + co-attention (flash softmax, un-padded bag read once,
    #    key reduction split across 2 TensorCores) + tiny combine kernel
    scores, h_coattn = _coattn_wsi(q_pad, wsi, params["H_w"], params["H_b"],
                                   cp, n_omics, l_pad)

    # 3) all transformer-encoder layers in one pipelined pallas_call
    path_trans, omic_trans = _run_transformers(h_coattn, g_pad,
                                               params["enc_layers"], n_omics)

    # 4) fused tail: gated attention pooling + rho + fusion MLP + classifier
    tp = params["tail"]
    n_classes = tp["cls_w"].shape[1]
    logits, a_path, a_omic = _pcall(
        functools.partial(_tail_kernel, n_real=n_omics),
        (jax.ShapeDtypeStruct((1, n_classes), jnp.float32),
         jax.ShapeDtypeStruct((l_pad, 1), jnp.float32),
         jax.ShapeDtypeStruct((l_pad, 1), jnp.float32)),
        path_trans, omic_trans,
        tp["p_wa"], tp["p_ba"], tp["p_wb"], tp["p_bb"], tp["p_wc"], tp["p_bc"],
        tp["p_rho_w"], tp["p_rho_b"],
        tp["o_wa"], tp["o_ba"], tp["o_wb"], tp["o_bb"], tp["o_wc"], tp["o_bc"],
        tp["o_rho_w"], tp["o_rho_b"],
        tp["fus_w1"], tp["fus_b1"], tp["fus_w2"], tp["fus_b2"],
        tp["cls_w"], tp["cls_b"])

    # tiny epilogue kept in plain JAX (glue): (n_omics, N) softmax + (1, n_classes) heads
    a_coattn = jax.nn.softmax(scores[:n_omics, :n_patches], axis=-1)
    hazards = jax.nn.sigmoid(logits)
    survs = jnp.cumprod(1.0 - hazards, axis=1)
    y = jax.nn.softmax(logits, axis=1)
    attention_scores = {
        "coattn": a_coattn,                          # (n_omics, N_patches)
        "path": jnp.transpose(a_path[:n_omics]),     # (1, n_omics)
        "omic": jnp.transpose(a_omic[:n_omics]),     # (1, n_omics)
    }
    return hazards, survs, y, attention_scores


# -------------------------------------------------------------- param init


def _dense(key, fan_in, fan_out):
    kw, kb = jax.random.split(key)
    bound = 1.0 / math.sqrt(fan_in)
    w = jax.random.uniform(kw, (fan_in, fan_out), jnp.float32, -bound, bound)
    b = jax.random.uniform(kb, (1, fan_out), jnp.float32, -bound, bound)
    return w, b


def _coattn_params(key, d):
    kq, kk, kv, ko = jax.random.split(key, 4)
    wq, bq = _dense(kq, d, d)
    scale = 1.0 / math.sqrt(d)                      # num_heads = 1 -> head_dim = d
    p = {"wq_s": wq * scale, "bq_s": bq * scale}
    wk, bk = _dense(kk, d, d)
    wv, bv = _dense(kv, d, d)
    p["wk"], p["bk"] = wk.astype(jnp.bfloat16), bk  # grid-invariant weights pre-cast to bf16
    p["wv"], p["bv"] = wv.astype(jnp.bfloat16), bv
    p["wo"], p["bo"] = _dense(ko, d, d)
    return p


def _encoder_layer_params(key, d, ff, num_heads):
    kq, kk, kv, ko, k1, k2 = jax.random.split(key, 6)
    wq, bq = _dense(kq, d, d)
    wk, bk = _dense(kk, d, d)
    wv, bv = _dense(kv, d, d)
    scale = 1.0 / math.sqrt(d // num_heads)         # folded into the Q block
    p = {"w_qkv": jnp.concatenate([wq * scale, wk, wv], axis=1),
         "b_qkv": jnp.concatenate([bq * scale, bk, bv], axis=1)}
    p["wo"], p["bo"] = _dense(ko, d, d)
    p["w1"], p["b1"] = _dense(k1, d, ff)
    p["w2"], p["b2"] = _dense(k2, ff, d)
    p["ln1_g"] = jnp.ones((1, d), jnp.float32)
    p["ln1_b"] = jnp.zeros((1, d), jnp.float32)
    p["ln2_g"] = jnp.ones((1, d), jnp.float32)
    p["ln2_b"] = jnp.zeros((1, d), jnp.float32)
    return p


def _omic_params(key, omic_sizes, pad_in, d):
    w1s, b1s, w2s, b2s = [], [], [], []
    for s, gk in zip(omic_sizes, jax.random.split(key, len(omic_sizes))):
        k1, k2 = jax.random.split(gk)
        w1, b1 = _dense(k1, s, 256)
        w2, b2 = _dense(k2, 256, d)
        w1s.append(jnp.pad(w1, ((0, pad_in - s), (0, 0))))   # zero rows for padded inputs
        b1s.append(b1)
        w2s.append(w2)
        b2s.append(b2)
    return {"w1": jnp.stack(w1s), "b1": jnp.stack(b1s),
            "w2": jnp.stack(w2s), "b2": jnp.stack(b2s)}


def _gated_params(key, d, hid):
    k1, k2, k3 = jax.random.split(key, 3)
    wa, ba = _dense(k1, d, hid)
    wb, bb = _dense(k2, d, hid)
    wc, bc = _dense(k3, hid, 1)
    return wa, ba, wb, bb, wc, bc


def init_params(key, omic_sizes, n_classes):
    keys = jax.random.split(key, 12)
    pad_in = _round_up(max(omic_sizes), 128)
    p = {}
    hw, hb = _dense(keys[0], 1024, D_MODEL)
    p["H_w"], p["H_b"] = hw.astype(jnp.bfloat16), hb          # H_w pre-cast to bf16
    p["omic_enc"] = _omic_params(keys[1], omic_sizes, pad_in, D_MODEL)
    p["coattn"] = _coattn_params(keys[2], D_MODEL)
    path_layers = [_encoder_layer_params(k, D_MODEL, FF_DIM, N_HEADS_TRANS)
                   for k in jax.random.split(keys[3], 2)]
    omic_layers = [_encoder_layer_params(k, D_MODEL, FF_DIM, N_HEADS_TRANS)
                   for k in jax.random.split(keys[4], 2)]
    all_layers = path_layers + omic_layers                     # [path0, path1, omic0, omic1]
    p["enc_layers"] = {k2: jnp.stack([lp[k2] for lp in all_layers])
                       for k2 in all_layers[0]}
    tail = {}
    (tail["p_wa"], tail["p_ba"], tail["p_wb"], tail["p_bb"],
     tail["p_wc"], tail["p_bc"]) = _gated_params(keys[5], D_MODEL, D_MODEL)
    (tail["o_wa"], tail["o_ba"], tail["o_wb"], tail["o_bb"],
     tail["o_wc"], tail["o_bc"]) = _gated_params(keys[6], D_MODEL, D_MODEL)
    tail["p_rho_w"], tail["p_rho_b"] = _dense(keys[7], D_MODEL, D_MODEL)
    tail["o_rho_w"], tail["o_rho_b"] = _dense(keys[8], D_MODEL, D_MODEL)
    tail["fus_w1"], tail["fus_b1"] = _dense(keys[9], 2 * D_MODEL, D_MODEL)
    tail["fus_w2"], tail["fus_b2"] = _dense(keys[10], D_MODEL, D_MODEL)
    tail["cls_w"], tail["cls_b"] = _dense(keys[11], D_MODEL, n_classes)
    p["tail"] = tail
    return p


if __name__ == "__main__":
    key = jax.random.PRNGKey(0)
    omic_sizes = [40, 60, 80]
    n_classes = 4
    n_patches = 1200   # exercises multi-tile flash path, 2-way key split and ragged tail

    k_params, k_wsi, *k_omics = jax.random.split(key, 2 + len(omic_sizes))
    params = init_params(k_params, omic_sizes, n_classes)
    # WSI bag produced in bf16 (halves the dominant HBM stream; kernel also accepts f32)
    wsi = jax.random.normal(k_wsi, (n_patches, 1024), jnp.float32).astype(jnp.bfloat16)
    omics = [jax.random.normal(k_omics[i], (1, s), jnp.float32)
             for i, s in enumerate(omic_sizes)]

    hazards, survs, y, attention_scores = forward(params, wsi, omics)
    jax.block_until_ready((hazards, survs, y, attention_scores))
    print("KERNEL_OK")
</pallas_src>

<mosaic_0001>
module attributes {stable_mosaic.version = 11 : i64} {
  func.func @_omic_encoder_kernel(%arg0: memref<3x128xf32, #tpu.memory_space<vmem>>, %arg1: memref<3x128x256xf32, #tpu.memory_space<vmem>>, %arg2: memref<3x1x256xf32, #tpu.memory_space<vmem>>, %arg3: memref<3x256x256xf32, #tpu.memory_space<vmem>>, %arg4: memref<3x1x256xf32, #tpu.memory_space<vmem>>, %arg5: memref<256x256xf32, #tpu.memory_space<vmem>>, %arg6: memref<1x256xf32, #tpu.memory_space<vmem>>, %arg7: memref<8x256xf32, #tpu.memory_space<vmem>>, %arg8: memref<8x256xf32, #tpu.memory_space<vmem>>) attributes {dimension_semantics = [], scalar_prefetch = 0 : i64, scratch_operands = 0 : i64, tpu.core_type = #tpu.core_type<tc>} {
    %cst = arith.constant 0.000000e+00 : f32
    %0 = vector.broadcast %cst : f32 to vector<8x256xf32>
    %c0 = arith.constant 0 : index
    %c0_0 = arith.constant 0 : index
    %1 = vector.load %arg7[%c0, %c0_0] : memref<8x256xf32, #tpu.memory_space<vmem>>, vector<8x256xf32>
    tpu.vector_store %arg7[%c0, %c0_0], %0 {strides = array<i32>} : memref<8x256xf32, #tpu.memory_space<vmem>>, vector<8x256xf32>,
    %c0_1 = arith.constant 0 : index
    %c0_2 = arith.constant 0 : index
    %2 = vector.load %arg0[%c0_1, %c0_2] : memref<3x128xf32, #tpu.memory_space<vmem>>, vector<1x128xf32>
    %c0_3 = arith.constant 0 : index
    %c0_4 = arith.constant 0 : index
    %c0_5 = arith.constant 0 : index
    %3 = vector.load %arg1[%c0_3, %c0_4, %c0_5] : memref<3x128x256xf32, #tpu.memory_space<vmem>>, vector<1x128x256xf32>
    %4 = vector.shape_cast %3 : vector<1x128x256xf32> to vector<128x256xf32>
    %cst_6 = arith.constant dense<0.000000e+00> : vector<1x256xf32>
    %5 = tpu.matmul %2, %4, %cst_6 {dimension_numbers = #tpu.dot_dimension_numbers<[1], [0], [0], [1], [0, 0, 1, 1], [], []>} : vector<1x128xf32>, vector<128x256xf32>, vector<1x256xf32> -> vector<1x256xf32>
    %c0_7 = arith.constant 0 : index
    %c0_8 = arith.constant 0 : index
    %c0_9 = arith.constant 0 : index
    %6 = vector.load %arg2[%c0_7, %c0_8, %c0_9] : memref<3x1x256xf32, #tpu.memory_space<vmem>>, vector<1x1x256xf32>
    %7 = vector.shape_cast %6 : vector<1x1x256xf32> to vector<1x256xf32>
    %8 = arith.addf %5, %7 : vector<1x256xf32>
    %cst_10 = arith.constant 0.000000e+00 : f32
    %9 = vector.broadcast %cst_10 : f32 to vector<1x256xf32>
    %10 = arith.cmpf ogt, %8, %9 : vector<1x256xf32>
    %cst_11 = arith.constant 0.000000e+00 : f32
    %11 = vector.broadcast %cst_11 : f32 to vector<1x256xf32>
    %12 = arith.minimumf %8, %11 : vector<1x256xf32>
    %13 = math.exp %12 : vector<1x256xf32>
    %cst_12 = arith.constant 1.000000e+00 : f32
    %14 = vector.broadcast %cst_12 : f32 to vector<1x256xf32>
    %15 = arith.subf %13, %14 : vector<1x256xf32>
    %16 = arith.select %10, %8, %15 : vector<1x256xi1>, vector<1x256xf32>
    %c0_13 = arith.constant 0 : index
    %c0_14 = arith.constant 0 : index
    %c0_15 = arith.constant 0 : index
    %17 = vector.load %arg3[%c0_13, %c0_14, %c0_15] : memref<3x256x256xf32, #tpu.memory_space<vmem>>, vector<1x256x256xf32>
    %18 = vector.shape_cast %17 : vector<1x256x256xf32> to vector<256x256xf32>
    %cst_16 = arith.constant dense<0.000000e+00> : vector<1x256xf32>
    %19 = tpu.matmul %16, %18, %cst_16 {dimension_numbers = #tpu.dot_dimension_numbers<[1], [0], [0], [1], [0, 0, 1, 1], [], []>} : vector<1x256xf32>, vector<256x256xf32>, vector<1x256xf32> -> vector<1x256xf32>
    %c0_17 = arith.constant 0 : index
    %c0_18 = arith.constant 0 : index
    %c0_19 = arith.constant 0 : index
    %20 = vector.load %arg4[%c0_17, %c0_18, %c0_19] : memref<3x1x256xf32, #tpu.memory_space<vmem>>, vector<1x1x256xf32>
    %21 = vector.shape_cast %20 : vector<1x1x256xf32> to vector<1x256xf32>
    %22 = arith.addf %19, %21 : vector<1x256xf32>
    %cst_20 = arith.constant 0.000000e+00 : f32
    %23 = vector.broadcast %cst_20 : f32 to vector<1x256xf32>
    %24 = arith.cmpf ogt, %22, %23 : vector<1x256xf32>
    %cst_21 = arith.constant 0.000000e+00 : f32
    %25 = vector.broadcast %cst_21 : f32 to vector<1x256xf32>
    %26 = arith.minimumf %22, %25 : vector<1x256xf32>
    %27 = math.exp %26 : vector<1x256xf32>
    %cst_22 = arith.constant 1.000000e+00 : f32
    %28 = vector.broadcast %cst_22 : f32 to vector<1x256xf32>
    %29 = arith.subf %27, %28 : vector<1x256xf32>
    %30 = arith.select %24, %22, %29 : vector<1x256xi1>, vector<1x256xf32>
    %c0_23 = arith.constant 0 : index
    %c0_24 = arith.constant 0 : index
    %31 = vector.load %arg7[%c0_23, %c0_24] : memref<8x256xf32, #tpu.memory_space<vmem>>, vector<1x256xf32>
    tpu.vector_store %arg7[%c0_23, %c0_24], %30 {strides = array<i32>} : memref<8x256xf32, #tpu.memory_space<vmem>>, vector<1x256xf32>,
    %c1 = arith.constant 1 : index
    %c0_25 = arith.constant 0 : index
    %32 = vector.load %arg0[%c1, %c0_25] : memref<3x128xf32, #tpu.memory_space<vmem>>, vector<1x128xf32>
    %c1_26 = arith.constant 1 : index
    %c0_27 = arith.constant 0 : index
    %c0_28 = arith.constant 0 : index
    %33 = vector.load %arg1[%c1_26, %c0_27, %c0_28] : memref<3x128x256xf32, #tpu.memory_space<vmem>>, vector<1x128x256xf32>
    %34 = vector.shape_cast %33 : vector<1x128x256xf32> to vector<128x256xf32>
    %cst_29 = arith.constant dense<0.000000e+00> : vector<1x256xf32>
    %35 = tpu.matmul %32, %34, %cst_29 {dimension_numbers = #tpu.dot_dimension_numbers<[1], [0], [0], [1], [0, 0, 1, 1], [], []>} : vector<1x128xf32>, vector<128x256xf32>, vector<1x256xf32> -> vector<1x256xf32>
    %c1_30 = arith.constant 1 : index
    %c0_31 = arith.constant 0 : index
    %c0_32 = arith.constant 0 : index
    %36 = vector.load %arg2[%c1_30, %c0_31, %c0_32] : memref<3x1x256xf32, #tpu.memory_space<vmem>>, vector<1x1x256xf32>
    %37 = vector.shape_cast %36 : vector<1x1x256xf32> to vector<1x256xf32>
    %38 = arith.addf %35, %37 : vector<1x256xf32>
    %cst_33 = arith.constant 0.000000e+00 : f32
    %39 = vector.broadcast %cst_33 : f32 to vector<1x256xf32>
    %40 = arith.cmpf ogt, %38, %39 : vector<1x256xf32>
    %cst_34 = arith.constant 0.000000e+00 : f32
    %41 = vector.broadcast %cst_34 : f32 to vector<1x256xf32>
    %42 = arith.minimumf %38, %41 : vector<1x256xf32>
    %43 = math.exp %42 : vector<1x256xf32>
    %cst_35 = arith.constant 1.000000e+00 : f32
    %44 = vector.broadcast %cst_35 : f32 to vector<1x256xf32>
    %45 = arith.subf %43, %44 : vector<1x256xf32>
    %46 = arith.select %40, %38, %45 : vector<1x256xi1>, vector<1x256xf32>
    %c1_36 = arith.constant 1 : index
    %c0_37 = arith.constant 0 : index
    %c0_38 = arith.constant 0 : index
    %47 = vector.load %arg3[%c1_36, %c0_37, %c0_38] : memref<3x256x256xf32, #tpu.memory_space<vmem>>, vector<1x256x256xf32>
    %48 = vector.shape_cast %47 : vector<1x256x256xf32> to vector<256x256xf32>
    %cst_39 = arith.constant dense<0.000000e+00> : vector<1x256xf32>
    %49 = tpu.matmul %46, %48, %cst_39 {dimension_numbers = #tpu.dot_dimension_numbers<[1], [0], [0], [1], [0, 0, 1, 1], [], []>} : vector<1x256xf32>, vector<256x256xf32>, vector<1x256xf32> -> vector<1x256xf32>
    %c1_40 = arith.constant 1 : index
    %c0_41 = arith.constant 0 : index
    %c0_42 = arith.constant 0 : index
    %50 = vector.load %arg4[%c1_40, %c0_41, %c0_42] : memref<3x1x256xf32, #tpu.memory_space<vmem>>, vector<1x1x256xf32>
    %51 = vector.shape_cast %50 : vector<1x1x256xf32> to vector<1x256xf32>
    %52 = arith.addf %49, %51 : vector<1x256xf32>
    %cst_43 = arith.constant 0.000000e+00 : f32
    %53 = vector.broadcast %cst_43 : f32 to vector<1x256xf32>
    %54 = arith.cmpf ogt, %52, %53 : vector<1x256xf32>
    %cst_44 = arith.constant 0.000000e+00 : f32
    %55 = vector.broadcast %cst_44 : f32 to vector<1x256xf32>
    %56 = arith.minimumf %52, %55 : vector<1x256xf32>
    %57 = math.exp %56 : vector<1x256xf32>
    %cst_45 = arith.constant 1.000000e+00 : f32
    %58 = vector.broadcast %cst_45 : f32 to vector<1x256xf32>
    %59 = arith.subf %57, %58 : vector<1x256xf32>
    %60 = arith.select %54, %52, %59 : vector<1x256xi1>, vector<1x256xf32>
    %c1_46 = arith.constant 1 : index
    %c0_47 = arith.constant 0 : index
    %61 = vector.load %arg7[%c1_46, %c0_47] : memref<8x256xf32, #tpu.memory_space<vmem>>, vector<1x256xf32>
    tpu.vector_store %arg7[%c1_46, %c0_47], %60 {strides = array<i32>} : memref<8x256xf32, #tpu.memory_space<vmem>>, vector<1x256xf32>,
    %c2 = arith.constant 2 : index
    %c0_48 = arith.constant 0 : index
    %62 = vector.load %arg0[%c2, %c0_48] : memref<3x128xf32, #tpu.memory_space<vmem>>, vector<1x128xf32>
    %c2_49 = arith.constant 2 : index
    %c0_50 = arith.constant 0 : index
    %c0_51 = arith.constant 0 : index
    %63 = vector.load %arg1[%c2_49, %c0_50, %c0_51] : memref<3x128x256xf32, #tpu.memory_space<vmem>>, vector<1x128x256xf32>
    %64 = vector.shape_cast %63 : vector<1x128x256xf32> to vector<128x256xf32>
    %cst_52 = arith.constant dense<0.000000e+00> : vector<1x256xf32>
    %65 = tpu.matmul %62, %64, %cst_52 {dimension_numbers = #tpu.dot_dimension_numbers<[1], [0], [0], [1], [0, 0, 1, 1], [], []>} : vector<1x128xf32>, vector<128x256xf32>, vector<1x256xf32> -> vector<1x256xf32>
    %c2_53 = arith.constant 2 : index
    %c0_54 = arith.constant 0 : index
    %c0_55 = arith.constant 0 : index
    %66 = vector.load %arg2[%c2_53, %c0_54, %c0_55] : memref<3x1x256xf32, #tpu.memory_space<vmem>>, vector<1x1x256xf32>
    %67 = vector.shape_cast %66 : vector<1x1x256xf32> to vector<1x256xf32>
    %68 = arith.addf %65, %67 : vector<1x256xf32>
    %cst_56 = arith.constant 0.000000e+00 : f32
    %69 = vector.broadcast %cst_56 : f32 to vector<1x256xf32>
    %70 = arith.cmpf ogt, %68, %69 : vector<1x256xf32>
    %cst_57 = arith.constant 0.000000e+00 : f32
    %71 = vector.broadcast %cst_57 : f32 to vector<1x256xf32>
    %72 = arith.minimumf %68, %71 : vector<1x256xf32>
    %73 = math.exp %72 : vector<1x256xf32>
    %cst_58 = arith.constant 1.000000e+00 : f32
    %74 = vector.broadcast %cst_58 : f32 to vector<1x256xf32>
    %75 = arith.subf %73, %74 : vector<1x256xf32>
    %76 = arith.select %70, %68, %75 : vector<1x256xi1>, vector<1x256xf32>
    %c2_59 = arith.constant 2 : index
    %c0_60 = arith.constant 0 : index
    %c0_61 = arith.constant 0 : index
    %77 = vector.load %arg3[%c2_59, %c0_60, %c0_61] : memref<3x256x256xf32, #tpu.memory_space<vmem>>, vector<1x256x256xf32>
    %78 = vector.shape_cast %77 : vector<1x256x256xf32> to vector<256x256xf32>
    %cst_62 = arith.constant dense<0.000000e+00> : vector<1x256xf32>
    %79 = tpu.matmul %76, %78, %cst_62 {dimension_numbers = #tpu.dot_dimension_numbers<[1], [0], [0], [1], [0, 0, 1, 1], [], []>} : vector<1x256xf32>, vector<256x256xf32>, vector<1x256xf32> -> vector<1x256xf32>
    %c2_63 = arith.constant 2 : index
    %c0_64 = arith.constant 0 : index
    %c0_65 = arith.constant 0 : index
    %80 = vector.load %arg4[%c2_63, %c0_64, %c0_65] : memref<3x1x256xf32, #tpu.memory_space<vmem>>, vector<1x1x256xf32>
    %81 = vector.shape_cast %80 : vector<1x1x256xf32> to vector<1x256xf32>
    %82 = arith.addf %79, %81 : vector<1x256xf32>
    %cst_66 = arith.constant 0.000000e+00 : f32
    %83 = vector.broadcast %cst_66 : f32 to vector<1x256xf32>
    %84 = arith.cmpf ogt, %82, %83 : vector<1x256xf32>
    %cst_67 = arith.constant 0.000000e+00 : f32
    %85 = vector.broadcast %cst_67 : f32 to vector<1x256xf32>
    %86 = arith.minimumf %82, %85 : vector<1x256xf32>
    %87 = math.exp %86 : vector<1x256xf32>
    %cst_68 = arith.constant 1.000000e+00 : f32
    %88 = vector.broadcast %cst_68 : f32 to vector<1x256xf32>
    %89 = arith.subf %87, %88 : vector<1x256xf32>
    %90 = arith.select %84, %82, %89 : vector<1x256xi1>, vector<1x256xf32>
    %c2_69 = arith.constant 2 : index
    %c0_70 = arith.constant 0 : index
    %91 = vector.load %arg7[%c2_69, %c0_70] : memref<8x256xf32, #tpu.memory_space<vmem>>, vector<1x256xf32>
    tpu.vector_store %arg7[%c2_69, %c0_70], %90 {strides = array<i32>} : memref<8x256xf32, #tpu.memory_space<vmem>>, vector<1x256xf32>,
    %c0_71 = arith.constant 0 : index
    %c0_72 = arith.constant 0 : index
    %92 = vector.load %arg7[%c0_71, %c0_72] : memref<8x256xf32, #tpu.memory_space<vmem>>, vector<8x256xf32>
    %c0_73 = arith.constant 0 : index
    %c0_74 = arith.constant 0 : index
    %93 = vector.load %arg5[%c0_73, %c0_74] : memref<256x256xf32, #tpu.memory_space<vmem>>, vector<256x256xf32>
    %cst_75 = arith.constant dense<0.000000e+00> : vector<8x256xf32>
    %94 = tpu.matmul %92, %93, %cst_75 {dimension_numbers = #tpu.dot_dimension_numbers<[1], [0], [0], [1], [0, 0, 1, 1], [], []>} : vector<8x256xf32>, vector<256x256xf32>, vector<8x256xf32> -> vector<8x256xf32>
    %c0_76 = arith.constant 0 : index
    %c0_77 = arith.constant 0 : index
    %95 = vector.load %arg6[%c0_76, %c0_77] : memref<1x256xf32, #tpu.memory_space<vmem>>, vector<1x256xf32>
    %96 = vector.broadcast %95 : vector<1x256xf32> to vector<8x256xf32>
    %97 = arith.addf %94, %96 : vector<8x256xf32>
    %c0_78 = arith.constant 0 : index
    %c0_79 = arith.constant 0 : index
    %98 = vector.load %arg8[%c0_78, %c0_79] : memref<8x256xf32, #tpu.memory_space<vmem>>, vector<8x256xf32>
    tpu.vector_store %arg8[%c0_78, %c0_79], %97 {strides = array<i32>} : memref<8x256xf32, #tpu.memory_space<vmem>>, vector<8x256xf32>,
    return
  }
}

</mosaic_0001>

<bundles_post_ra>
// kernel: tpu_custom_call.1
= control target key start
LH: loop header
LB: loop body
LE: loop exit
PB: predicated region body
PF: predicated region fallthrough
CT: control target
= control target key end

     0   :  { %14 = vsyncpa [#allocation3], 0  ;;  %s1469_s0 = inlined_call_operand.hbm [shape: f32[3,128], index: 0, kind: input, shape index: {}]   ;;  %s1470_s1 = inlined_call_operand.hbm [shape: f32[3,128,256], index: 1, kind: input, shape index: {}]   ;;  %s1471_s2 = inlined_call_operand.hbm [shape: f32[3,1,256], index: 2, kind: input, shape index: {}]   ;;  %s1472_s3 = inlined_call_operand.hbm [shape: f32[3,256,256], index: 3, kind: input, shape index: {}]   ;;  %s1473_s4 = inlined_call_operand.hbm [shape: f32[3,1,256], index: 4, kind: input, shape index: {}]   ;;  %s1474_s5 = inlined_call_operand.hbm [shape: f32[256,256], index: 5, kind: input, shape index: {}]   ;;  %s1475_s6 = inlined_call_operand.vmem [shape: f32[1,256], index: 6, kind: input, shape index: {}]   ;;  %s1476_s7 = inlined_call_operand.hbm [shape: f32[8,256], index: 7, kind: output, shape index: {0}]   ;;  %s1477_s8 = inlined_call_operand.hbm [shape: f32[8,256], index: 8, kind: output, shape index: {1}]  }
   0x1   :  { %15 = vsyncpa [#allocation6], 0 }
   0x2   :  { %16 = vsyncpa [#allocation9], 0 }
   0x3   :  { %17 = vsyncpa [#allocation12], 0 }
   0x4   :  { %18 = vsyncpa [#allocation4], 0  ;;  %s35_s29 = sshll.u32 %s1470_s1, 4  ;;  %s36_s29 = int_to_ptr.hbm [resolvable:$true] %s35_s29 }
   0x5   :  { %19 = vsyncpa [#allocation15], 0  ;;  %s1362_s30 = smov [#allocation5]   ;;  %s61_s12 = sshll.u32 %s1472_s3, 4  ;;  %s62_s12 = int_to_ptr.hbm [resolvable:$true] %s61_s12 }
   0x6   :  { %s37_s9 = sshll.u32 %s1362_s30, 4  ;;  %s1363_s13 = smov 256   ;;  %s38_s9 = int_to_ptr.vmem [resolvable:$true] %s37_s9 }
   0x7   :  { %s1364_s14 = smov 16   ;;  %s1365_s15 = smov [#allocation8]  }
   0x8   :  { %43 = dma.hbm_to_vmem [thread:$0]  %s36_s29, 12288, %s38_s9, [#allocation6], %s1363_s13, %s1363_s13, %s1364_s14  }
   0x9   :  { %s63_s16 = sshll.u32 %s1365_s15, 4  ;;  %s25_s18 = sshll.u32 %s1469_s0, 4  ;;  %s64_s16 = int_to_ptr.vmem [resolvable:$true] %s63_s16  ;;  %s26_s18 = int_to_ptr.hbm [resolvable:$true] %s25_s18 }
   0xa   :  { %69 = dma.hbm_to_vmem [thread:$0]  %s62_s12, 24576, %s64_s16, [#allocation9], %s1363_s13, %s1363_s13, %s1364_s14  }
   0xb   :  { %s48_s20 = sshll.u32 %s1471_s2, 4  ;;  %s1366_s21 = smov [#allocation2]   ;;  %s49_s20 = int_to_ptr.hbm [resolvable:$true] %s48_s20 }
   0xc   :  { %s27_s22 = sshll.u32 %s1366_s21, 4  ;;  %s1367_s23 = smov [#allocation7]   ;;  %s28_s22 = int_to_ptr.vmem [resolvable:$true] %s27_s22 }
   0xd   :  { %30 = dma.hbm_to_vmem [thread:$0]  %s26_s18, 64, %s28_s22, [#allocation3]  }
   0xe   :  { %s50_s24 = sshll.u32 %s1367_s23, 4  ;;  %s1368_s25 = smov 32   ;;  %s51_s24 = int_to_ptr.vmem [resolvable:$true] %s50_s24 }
   0xf   :  { %s1369_s0 = smov 2   ;;  %s74_s28 = sshll.u32 %s1473_s4, 4  ;;  %s75_s28 = int_to_ptr.hbm [resolvable:$true] %s74_s28 }
  0x10   :  { %56 = dma.hbm_to_vmem [thread:$0]  %s49_s20, 96, %s51_s24, [#allocation6], %s1368_s25, %s1368_s25, %s1369_s0  }
  0x11   :  { %s1370_s29 = smov [#allocation10]   ;;  %s87_s10 = sshll.u32 %s1474_s5, 4  ;;  %s88_s10 = int_to_ptr.hbm [resolvable:$true] %s87_s10 }
  0x12   :  { %s76_s30 = sshll.u32 %s1370_s29, 4  ;;  %s1371_s11 = smov [#allocation11]   ;;  %s77_s30 = int_to_ptr.vmem [resolvable:$true] %s76_s30 }
  0x13   :  { %82 = dma.hbm_to_vmem [thread:$0]  %s75_s28, 96, %s77_s30, [#allocation9], %s1368_s25, %s1368_s25, %s1369_s0  }
  0x14   :  { %s89_s12 = sshll.u32 %s1371_s11, 4  ;;  %s90_s12 = int_to_ptr.vmem [resolvable:$true] %s89_s12 }
  0x15   :  { %95 = dma.hbm_to_vmem [thread:$0]  %s88_s10, 8192, %s90_s12, [#allocation12], %s1363_s13, %s1363_s13, %s1364_s14  }
  0x16   :  { %1350 = dma.done.wait [#allocation3], 64  }
  0x17   :  { %1351 = vsyncadd [#allocation3], 4294967232 }
  0x18   :  { %1352 = dma.done.wait [#allocation6], 12384  }
  0x19   :  { %1353 = vsyncadd [#allocation6], 4294954912 }
  0x1a   :  { %1354 = dma.done.wait [#allocation9], 24672  }
  0x1b   :  { %1355 = vsyncadd [#allocation9], 4294942624 }
  0x1c   :  { %1356 = dma.done.wait [#allocation12], 8192  }
  0x1d   :  { %1357 = vsyncadd [#allocation12], 4294959104  ;;  %v155_v0 = vld [vmem:[#allocation5 + $0xf0] sm:$0xff]  ;;  %v156_v1 = vld [vmem:[#allocation5 + $0xf8] sm:$0xff]  ;;  %vm380_vm3 = vcmask 1040384   ;;  %s1373_s4 = smov [#allocation13]  }
  0x1e   :  { %v153_v2 = vld [vmem:[#allocation5 + $0xe0] sm:$0xff]  ;;  %163 = vmatpush.msra.mxu0 %v155_v0  ;;  %183 = vmatpush.msra.mxu1 %v156_v1  ;;  %v154_v3 = vld [vmem:[#allocation5 + $0xe8] sm:$0xff]  ;;  %v151_v4 = vld [vmem:[#allocation5 + $0xd0] sm:$0xff]  ;;  %s1078_s5 = sshll.u32 %s1373_s4, 4  ;;  %s1080_s15 = sshll.u32 %s1476_s7, 4  ;;  %s1079_s5 = int_to_ptr.vmem [resolvable:$true] %s1078_s5  ;;  %s1081_s15 = int_to_ptr.hbm [resolvable:$true] %s1080_s15 }
  0x1f   :  { %v152_v5 = vld [vmem:[#allocation5 + $0xd8] sm:$0xff]  ;;  %v149_v6 = vld [vmem:[#allocation5 + $0xc0] sm:$0xff]  ;;  %v150_v7 = vld [vmem:[#allocation5 + $0xc8] sm:$0xff]  ;;  %s1374_s1 = smov [#allocation14]   ;;  %s1091_s7 = sshll.u32 %s1477_s8, 4  ;;  %s1092_s7 = int_to_ptr.hbm [resolvable:$true] %s1091_s7 }
  0x20   :  { %164 = vmatpush.msra.mxu0 %v153_v2  ;;  %184 = vmatpush.msra.mxu1 %v154_v3  ;;  %v147_v8 = vld [vmem:[#allocation5 + $0xb0] sm:$0xff]  ;;  %v148_v9 = vld [vmem:[#allocation5 + $0xb8] sm:$0xff]  ;;  %v145_v10 = vld [vmem:[#allocation5 + $0xa0] sm:$0xff]  ;;  %s1089_s18 = sshll.u32 %s1374_s1, 4  ;;  %s1090_s18 = int_to_ptr.vmem [resolvable:$true] %s1089_s18 }
  0x21   :  { %v146_v11 = vld [vmem:[#allocation5 + $0xa8] sm:$0xff]  ;;  %v143_v12 = vld [vmem:[#allocation5 + $0x90] sm:$0xff]  ;;  %v144_v13 = vld [vmem:[#allocation5 + $0x98] sm:$0xff] }
  0x22   :  { %165 = vmatpush.msra.mxu0 %v151_v4  ;;  %185 = vmatpush.msra.mxu1 %v152_v5  ;;  %v245_v14 = vld [vmem:[#allocation8 + $0xf0] sm:$0xff]  ;;  %v243_v16 = vld [vmem:[#allocation8 + $0xe0] sm:$0xff]  ;;  %v246_v55 = vld [vmem:[#allocation8 + $0xf8] sm:$0xff] }
  0x23   :  { %v277_v15 = vld [vmem:[#allocation8 + $0x1f0] sm:$0xff]  ;;  %v141_v17 = vld [vmem:[#allocation5 + $0x80] sm:$0xff]  ;;  %v142_v18 = vld [vmem:[#allocation5 + $0x88] sm:$0xff]  ;;  %285 = vmatpush.msra.mxu2 %v245_v14 }
  0x24   :  { %166 = vmatpush.msra.mxu0 %v149_v6  ;;  %186 = vmatpush.msra.mxu1 %v150_v7  ;;  %v275_v19 = vld [vmem:[#allocation8 + $0x1e0] sm:$0xff]  ;;  %v241_v20 = vld [vmem:[#allocation8 + $0xd0] sm:$0xff]  ;;  %v278_v56 = vld [vmem:[#allocation8 + $0x1f8] sm:$0xff] }
  0x25   :  { %305 = vmatpush.msra.mxu3 %v277_v15  ;;  %v273_v21 = vld [vmem:[#allocation8 + $0x1d0] sm:$0xff]  ;;  %286 = vmatpush.msra.mxu2 %v243_v16  ;;  %v239_v24 = vld [vmem:[#allocation8 + $0xc0] sm:$0xff]  ;;  %v244_v59 = vld [vmem:[#allocation8 + $0xe8] sm:$0xff] }
  0x26   :  { %167 = vmatpush.msra.mxu0 %v147_v8  ;;  %187 = vmatpush.msra.mxu1 %v148_v9  ;;  %v139_v22 = vld [vmem:[#allocation5 + $0x70] sm:$0xff]  ;;  %v140_v23 = vld [vmem:[#allocation5 + $0x78] sm:$0xff]  ;;  %v271_v25 = vld [vmem:[#allocation8 + $0x1c0] sm:$0xff] }
  0x27   :  { %306 = vmatpush.msra.mxu3 %v275_v19  ;;  %v137_v26 = vld [vmem:[#allocation5 + $0x60] sm:$0xff]  ;;  %v138_v27 = vld [vmem:[#allocation5 + $0x68] sm:$0xff]  ;;  %287 = vmatpush.msra.mxu2 %v241_v20  ;;  %v237_v28 = vld [vmem:[#allocation8 + $0xb0] sm:$0xff] }
  0x28   :  { %168 = vmatpush.msra.mxu0 %v145_v10  ;;  %188 = vmatpush.msra.mxu1 %v146_v11  ;;  %v269_v29 = vld [vmem:[#allocation8 + $0x1b0] sm:$0xff]  ;;  %v235_v32 = vld [vmem:[#allocation8 + $0xa0] sm:$0xff]  ;;  %v276_v60 = vld [vmem:[#allocation8 + $0x1e8] sm:$0xff] }
  0x29   :  { %307 = vmatpush.msra.mxu3 %v273_v21  ;;  %v135_v30 = vld [vmem:[#allocation5 + $0x50] sm:$0xff]  ;;  %v136_v31 = vld [vmem:[#allocation5 + $0x58] sm:$0xff]  ;;  %288 = vmatpush.msra.mxu2 %v239_v24  ;;  %v267_v33 = vld [vmem:[#allocation8 + $0x1a0] sm:$0xff] }
  0x2a   :  { %169 = vmatpush.msra.mxu0 %v143_v12  ;;  %189 = vmatpush.msra.mxu1 %v144_v13  ;;  %v133_v34 = vld [vmem:[#allocation5 + $0x40] sm:$0xff]  ;;  %v134_v35 = vld [vmem:[#allocation5 + $0x48] sm:$0xff]  ;;  %v233_v36 = vld [vmem:[#allocation8 + $0x90] sm:$0xff] }
  0x2b   :  { %308 = vmatpush.msra.mxu3 %v271_v25  ;;  %289 = vmatpush.msra.mxu2 %v237_v28  ;;  %v265_v37 = vld [vmem:[#allocation8 + $0x190] sm:$0xff]  ;;  %v231_v40 = vld [vmem:[#allocation8 + $0x80] sm:$0xff]  ;;  %v242_v63 = vld [vmem:[#allocation8 + $0xd8] sm:$0xff] }
  0x2c   :  { %170 = vmatpush.msra.mxu0 %v141_v17  ;;  %190 = vmatpush.msra.mxu1 %v142_v18  ;;  %v131_v38 = vld [vmem:[#allocation5 + $0x30] sm:$0xff]  ;;  %v132_v39 = vld [vmem:[#allocation5 + $0x38] sm:$0xff]  ;;  %v263_v41 = vld [vmem:[#allocation8 + $0x180] sm:$0xff] }
  0x2d   :  { %309 = vmatpush.msra.mxu3 %v269_v29  ;;  %290 = vmatpush.msra.mxu2 %v235_v32  ;;  %v129_v42 = vld [vmem:[#allocation5 + $0x20] sm:$0xff]  ;;  %v130_v43 = vld [vmem:[#allocation5 + $0x28] sm:$0xff]  ;;  %v229_v44 = vld [vmem:[#allocation8 + $0x70] sm:$0xff] }
  0x2e   :  { %171 = vmatpush.msra.mxu0 %v139_v22  ;;  %191 = vmatpush.msra.mxu1 %v140_v23  ;;  %v261_v45 = vld [vmem:[#allocation8 + $0x170] sm:$0xff]  ;;  %v227_v48 = vld [vmem:[#allocation8 + $0x60] sm:$0xff]  ;;  %v274_v0 = vld [vmem:[#allocation8 + $0x1d8] sm:$0xff] }
  0x2f   :  { %310 = vmatpush.msra.mxu3 %v267_v33  ;;  %291 = vmatpush.msra.mxu2 %v233_v36  ;;  %v127_v46 = vld [vmem:[#allocation5 + $0x10] sm:$0xff]  ;;  %v128_v47 = vld [vmem:[#allocation5 + $0x18] sm:$0xff]  ;;  %v259_v49 = vld [vmem:[#allocation8 + $0x160] sm:$0xff] }
  0x30   :  { %172 = vmatpush.msra.mxu0 %v137_v26  ;;  %192 = vmatpush.msra.mxu1 %v138_v27  ;;  %v125_v50 = vld [vmem:[#allocation5] sm:$0xff]  ;;  %v126_v51 = vld [vmem:[#allocation5 + $0x8] sm:$0xff]  ;;  %v124_v52 = vld [vmem:[#allocation2] sm:$0x1] }
  0x31   :  { %311 = vmatpush.msra.mxu3 %v265_v37  ;;  %292 = vmatpush.msra.mxu2 %v231_v40  ;;  %v225_v53 = vld [vmem:[#allocation8 + $0x50] sm:$0xff]  ;;  %v223_v57 = vld [vmem:[#allocation8 + $0x40] sm:$0xff]  ;;  %v240_v3 = vld [vmem:[#allocation8 + $0xc8] sm:$0xff] }
  0x32   :  { %173 = vmatpush.msra.mxu0 %v135_v30  ;;  %193 = vmatpush.msra.mxu1 %v136_v31  ;;  %v257_v54 = vld [vmem:[#allocation8 + $0x150] sm:$0xff]  ;;  %v255_v58 = vld [vmem:[#allocation8 + $0x140] sm:$0xff]  ;;  %v272_v4 = vld [vmem:[#allocation8 + $0x1c8] sm:$0xff] }
  0x33   :  { %312 = vmatpush.msra.mxu3 %v263_v41  ;;  %293 = vmatpush.msra.mxu2 %v229_v44  ;;  %v221_v61 = vld [vmem:[#allocation8 + $0x30] sm:$0xff]  ;;  %v219_v1 = vld [vmem:[#allocation8 + $0x20] sm:$0xff]  ;;  %v238_v7 = vld [vmem:[#allocation8 + $0xb8] sm:$0xff] }
  0x34   :  { %174 = vmatpush.msra.mxu0 %v133_v34  ;;  %194 = vmatpush.msra.mxu1 %v134_v35  ;;  %v253_v62 = vld [vmem:[#allocation8 + $0x130] sm:$0xff]  ;;  %v251_v2 = vld [vmem:[#allocation8 + $0x120] sm:$0xff]  ;;  %v270_v8 = vld [vmem:[#allocation8 + $0x1b8] sm:$0xff] }
  0x35   :  { %313 = vmatpush.msra.mxu3 %v261_v45  ;;  %294 = vmatpush.msra.mxu2 %v227_v48  ;;  %v217_v5 = vld [vmem:[#allocation8 + $0x10] sm:$0xff]  ;;  %v215_v9 = vld [vmem:[#allocation8] sm:$0xff]  ;;  %v236_v13 = vld [vmem:[#allocation8 + $0xa8] sm:$0xff] }
  0x36   :  { %175 = vmatpush.msra.mxu0 %v131_v38  ;;  %195 = vmatpush.msra.mxu1 %v132_v39  ;;  %v249_v6 = vld [vmem:[#allocation8 + $0x110] sm:$0xff]  ;;  %v247_v10 = vld [vmem:[#allocation8 + $0x100] sm:$0xff]  ;;  %v268_v14 = vld [vmem:[#allocation8 + $0x1a8] sm:$0xff] }
  0x37   :  { %314 = vmatpush.msra.mxu3 %v259_v49  ;;  %295 = vmatpush.msra.mxu2 %v225_v53  ;;  %v421_v11 = vld [vmem:[#allocation5 + $0x1f0] sm:$0xff]  ;;  %v422_v12 = vld [vmem:[#allocation5 + $0x1f8] sm:$0xff]  ;;  %v419_v15 = vld [vmem:[#allocation5 + $0x1e0] sm:$0xff] }
  0x38   :  { %176 = vmatpush.msra.mxu0 %v129_v42  ;;  %196 = vmatpush.msra.mxu1 %v130_v43  ;;  %v420_v16 = vld [vmem:[#allocation5 + $0x1e8] sm:$0xff]  ;;  %v234_v17 = vld [vmem:[#allocation8 + $0x98] sm:$0xff]  ;;  %v417_v19 = vld [vmem:[#allocation5 + $0x1d0] sm:$0xff] }
  0x39   :  { %315 = vmatpush.msra.mxu3 %v257_v54  ;;  %296 = vmatpush.msra.mxu2 %v223_v57  ;;  %v266_v18 = vld [vmem:[#allocation8 + $0x198] sm:$0xff]  ;;  %v232_v21 = vld [vmem:[#allocation8 + $0x88] sm:$0xff] }
  0x3a   :  { %177 = vmatpush.msra.mxu0 %v127_v46  ;;  %197 = vmatpush.msra.mxu1 %v128_v47  ;;  %v418_v20 = vld [vmem:[#allocation5 + $0x1d8] sm:$0xff]  ;;  %v264_v22 = vld [vmem:[#allocation8 + $0x188] sm:$0xff]  ;;  %v415_v23 = vld [vmem:[#allocation5 + $0x1c0] sm:$0xff] }
  0x3b   :  { %316 = vmatpush.msra.mxu3 %v255_v58  ;;  %297 = vmatpush.msra.mxu2 %v221_v61  ;;  %v416_v24 = vld [vmem:[#allocation5 + $0x1c8] sm:$0xff]  ;;  %v230_v25 = vld [vmem:[#allocation8 + $0x78] sm:$0xff]  ;;  %v413_v27 = vld [vmem:[#allocation5 + $0x1b0] sm:$0xff] }
  0x3c   :  { %178 = vmatpush.msra.mxu0 %v125_v50  ;;  %198 = vmatpush.msra.mxu1 %v126_v51  ;;  %v262_v26 = vld [vmem:[#allocation8 + $0x178] sm:$0xff]  ;;  %v228_v29 = vld [vmem:[#allocation8 + $0x68] sm:$0xff] }
  0x3d   :  { %179 = vmatmul.f32.vlgmr.msra.gmra.mxu0 %v124_v52  ;;  %199 = vmatmul.f32.vlgmr.msra.gmra.mxu1 %v124_v52  ;;  %v414_v28 = vld [vmem:[#allocation5 + $0x1b8] sm:$0xff]  ;;  %v260_v30 = vld [vmem:[#allocation8 + $0x168] sm:$0xff]  ;;  %v411_v31 = vld [vmem:[#allocation5 + $0x1a0] sm:$0xff] }
  0x3e   :  { %325 = vmatpush.msrb.mxu0 %v246_v55  ;;  %345 = vmatpush.msrb.mxu1 %v278_v56  ;;  %v412_v32 = vld [vmem:[#allocation5 + $0x1a8] sm:$0xff]  ;;  %v226_v33 = vld [vmem:[#allocation8 + $0x58] sm:$0xff]  ;;  %v409_v35 = vld [vmem:[#allocation5 + $0x190] sm:$0xff] }
  0x3f   :  { %317 = vmatpush.msra.mxu3 %v253_v62  ;;  %298 = vmatpush.msra.mxu2 %v219_v1  ;;  %v258_v34 = vld [vmem:[#allocation8 + $0x158] sm:$0xff]  ;;  %v224_v37 = vld [vmem:[#allocation8 + $0x48] sm:$0xff] }
  0x40   :  { %326 = vmatpush.msrb.mxu0 %v244_v59  ;;  %346 = vmatpush.msrb.mxu1 %v276_v60  ;;  %v410_v36 = vld [vmem:[#allocation5 + $0x198] sm:$0xff]  ;;  %v256_v38 = vld [vmem:[#allocation8 + $0x148] sm:$0xff]  ;;  %v407_v39 = vld [vmem:[#allocation5 + $0x180] sm:$0xff] }
  0x41   :  { %318 = vmatpush.msra.mxu3 %v251_v2  ;;  %299 = vmatpush.msra.mxu2 %v217_v5  ;;  %v408_v40 = vld [vmem:[#allocation5 + $0x188] sm:$0xff]  ;;  %v222_v41 = vld [vmem:[#allocation8 + $0x38] sm:$0xff]  ;;  %v405_v43 = vld [vmem:[#allocation5 + $0x170] sm:$0xff] }
  0x42   :  { %327 = vmatpush.msrb.mxu0 %v242_v63  ;;  %347 = vmatpush.msrb.mxu1 %v274_v0  ;;  %v254_v42 = vld [vmem:[#allocation8 + $0x138] sm:$0xff]  ;;  %v220_v45 = vld [vmem:[#allocation8 + $0x28] sm:$0xff]  ;;  %v513_v2 = vld [vmem:[#allocation8 + $0x2f0] sm:$0xff] }
  0x43   :  { %319 = vmatpush.msra.mxu3 %v249_v6  ;;  %300 = vmatpush.msra.mxu2 %v215_v9  ;;  %v406_v44 = vld [vmem:[#allocation5 + $0x178] sm:$0xff]  ;;  %v252_v46 = vld [vmem:[#allocation8 + $0x128] sm:$0xff]  ;;  %v403_v47 = vld [vmem:[#allocation5 + $0x160] sm:$0xff] }
  0x44   :  { %328 = vmatpush.msrb.mxu0 %v240_v3  ;;  %348 = vmatpush.msrb.mxu1 %v272_v4  ;;  %v404_v48 = vld [vmem:[#allocation5 + $0x168] sm:$0xff]  ;;  %v218_v49 = vld [vmem:[#allocation8 + $0x18] sm:$0xff]  ;;  %v401_v51 = vld [vmem:[#allocation5 + $0x150] sm:$0xff] }
  0x45   :  { %320 = vmatpush.msra.mxu3 %v247_v10  ;;  %430 = vmatpush.msrb.mxu2 %v421_v11  ;;  %v250_v50 = vld [vmem:[#allocation8 + $0x118] sm:$0xff]  ;;  %v216_v53 = vld [vmem:[#allocation8 + $0x8] sm:$0xff]  ;;  %v545_v3 = vld [vmem:[#allocation8 + $0x3f0] sm:$0xff] }
  0x46   :  { %329 = vmatpush.msrb.mxu0 %v238_v7  ;;  %349 = vmatpush.msrb.mxu1 %v270_v8  ;;  %v402_v52 = vld [vmem:[#allocation5 + $0x158] sm:$0xff]  ;;  %v248_v54 = vld [vmem:[#allocation8 + $0x108] sm:$0xff]  ;;  %v399_v55 = vld [vmem:[#allocation5 + $0x140] sm:$0xff] }
  0x47   :  { %450 = vmatpush.msrb.mxu3 %v422_v12  ;;  %431 = vmatpush.msrb.mxu2 %v419_v15  ;;  %v400_v56 = vld [vmem:[#allocation5 + $0x148] sm:$0xff]  ;;  %v397_v57 = vld [vmem:[#allocation5 + $0x130] sm:$0xff]  ;;  %v398_v58 = vld [vmem:[#allocation5 + $0x138] sm:$0xff] }
  0x48   :  { %330 = vmatpush.msrb.mxu0 %v236_v13  ;;  %350 = vmatpush.msrb.mxu1 %v268_v14  ;;  %v395_v59 = vld [vmem:[#allocation5 + $0x120] sm:$0xff]  ;;  %v396_v60 = vld [vmem:[#allocation5 + $0x128] sm:$0xff]  ;;  %v393_v61 = vld [vmem:[#allocation5 + $0x110] sm:$0xff] }
  0x49   :  { %451 = vmatpush.msrb.mxu3 %v420_v16  ;;  %432 = vmatpush.msrb.mxu2 %v417_v19  ;;  %v394_v62 = vld [vmem:[#allocation5 + $0x118] sm:$0xff]  ;;  %v391_v63 = vld [vmem:[#allocation5 + $0x100] sm:$0xff]  ;;  %v392_v0 = vld [vmem:[#allocation5 + $0x108] sm:$0xff] }
  0x4a   :  { %331 = vmatpush.msrb.mxu0 %v234_v17  ;;  %351 = vmatpush.msrb.mxu1 %v266_v18  ;;  %v157_v1 = vld [vmem:[#allocation7] sm:$0x3]  ;;  %v511_v4 = vld [vmem:[#allocation8 + $0x2e0] sm:$0xff]  ;;  %v509_v6 = vld [vmem:[#allocation8 + $0x2d0] sm:$0xff] }
  0x4b   :  { %452 = vmatpush.msrb.mxu3 %v418_v20  ;;  %433 = vmatpush.msrb.mxu2 %v415_v23  ;;  %v543_v5 = vld [vmem:[#allocation8 + $0x3e0] sm:$0xff]  ;;  %v541_v7 = vld [vmem:[#allocation8 + $0x3d0] sm:$0xff]  ;;  %v159_v8 = vperm.slane %v157_v1, 0  ;;  %v160_v9 = vperm.slane %v157_v1, 1 }
  0x4c   :  { %332 = vmatpush.msrb.mxu0 %v232_v21  ;;  %352 = vmatpush.msrb.mxu1 %v264_v22  ;;  %v507_v10 = vld [vmem:[#allocation8 + $0x2c0] sm:$0xff]  ;;  %v505_v14 = vld [vmem:[#allocation8 + $0x2b0] sm:$0xff] }
  0x4d   :  { %453 = vmatpush.msrb.mxu3 %v416_v24  ;;  %434 = vmatpush.msrb.mxu2 %v413_v27  ;;  %v539_v11 = vld [vmem:[#allocation8 + $0x3c0] sm:$0xff]  ;;  %v537_v15 = vld [vmem:[#allocation8 + $0x3b0] sm:$0xff] }
  0x4e   :  { %333 = vmatpush.msrb.mxu0 %v230_v25  ;;  %353 = vmatpush.msrb.mxu1 %v262_v26  ;;  %v503_v18 = vld [vmem:[#allocation8 + $0x2a0] sm:$0xff]  ;;  %v501_v22 = vld [vmem:[#allocation8 + $0x290] sm:$0xff] }
  0x4f   :  { %454 = vmatpush.msrb.mxu3 %v414_v28  ;;  %435 = vmatpush.msrb.mxu2 %v411_v31  ;;  %v535_v19 = vld [vmem:[#allocation8 + $0x3a0] sm:$0xff]  ;;  %v533_v23 = vld [vmem:[#allocation8 + $0x390] sm:$0xff] }
  0x50   :  { %334 = vmatpush.msrb.mxu0 %v228_v29  ;;  %354 = vmatpush.msrb.mxu1 %v260_v30  ;;  %v499_v26 = vld [vmem:[#allocation8 + $0x280] sm:$0xff]  ;;  %v497_v28 = vld [vmem:[#allocation8 + $0x270] sm:$0xff] }
  0x51   :  { %455 = vmatpush.msrb.mxu3 %v412_v32  ;;  %436 = vmatpush.msrb.mxu2 %v409_v35  ;;  %v531_v27 = vld [vmem:[#allocation8 + $0x380] sm:$0xff]  ;;  %v529_v29 = vld [vmem:[#allocation8 + $0x370] sm:$0xff] }
  0x52   :  { %335 = vmatpush.msrb.mxu0 %v226_v33  ;;  %355 = vmatpush.msrb.mxu1 %v258_v34  ;;  %v495_v30 = vld [vmem:[#allocation8 + $0x260] sm:$0xff]  ;;  %v493_v32 = vld [vmem:[#allocation8 + $0x250] sm:$0xff] }
  0x53   :  { %456 = vmatpush.msrb.mxu3 %v410_v36  ;;  %437 = vmatpush.msrb.mxu2 %v407_v39  ;;  %v527_v31 = vld [vmem:[#allocation8 + $0x360] sm:$0xff]  ;;  %v525_v33 = vld [vmem:[#allocation8 + $0x350] sm:$0xff] }
  0x54   :  { %336 = vmatpush.msrb.mxu0 %v224_v37  ;;  %356 = vmatpush.msrb.mxu1 %v256_v38  ;;  %v491_v39 = vld [vmem:[#allocation8 + $0x240] sm:$0xff] }
  0x55   :  { %457 = vmatpush.msrb.mxu3 %v408_v40  ;;  %438 = vmatpush.msrb.mxu2 %v405_v43  ;;  %v523_v40 = vld [vmem:[#allocation8 + $0x340] sm:$0xff]  ;;  %v514_v43 = vld [vmem:[#allocation8 + $0x2f8] sm:$0xff] }
  0x56   :  { %337 = vmatpush.msrb.mxu0 %v222_v41  ;;  %357 = vmatpush.msrb.mxu1 %v254_v42  ;;  %v389_v42 = vld [vmem:[#allocation2 + $0x1] sm:$0x1]  ;;  %v684_v1 = vld [vmem:[#allocation5 + $0x2e0] sm:$0xff] }
  0x57   :  { %458 = vmatpush.msrb.mxu3 %v406_v44  ;;  %439 = vmatpush.msrb.mxu2 %v403_v47  ;;  %v546_v44 = vld [vmem:[#allocation8 + $0x3f8] sm:$0xff]  ;;  %v512_v47 = vld [vmem:[#allocation8 + $0x2e8] sm:$0xff] }
  0x58   :  { %338 = vmatpush.msrb.mxu0 %v220_v45  ;;  %358 = vmatpush.msrb.mxu1 %v252_v46  ;;  %v489_v45 = vld [vmem:[#allocation8 + $0x230] sm:$0xff] }
  0x59   :  { %459 = vmatpush.msrb.mxu3 %v404_v48  ;;  %440 = vmatpush.msrb.mxu2 %v401_v51  ;;  %v521_v46 = vld [vmem:[#allocation8 + $0x330] sm:$0xff]  ;;  %v544_v48 = vld [vmem:[#allocation8 + $0x3e8] sm:$0xff]  ;;  %v510_v51 = vld [vmem:[#allocation8 + $0x2d8] sm:$0xff] }
  0x5a   :  { %339 = vmatpush.msrb.mxu0 %v218_v49  ;;  %359 = vmatpush.msrb.mxu1 %v250_v50  ;;  %v487_v49 = vld [vmem:[#allocation8 + $0x220] sm:$0xff] }
  0x5b   :  { %460 = vmatpush.msrb.mxu3 %v402_v52  ;;  %441 = vmatpush.msrb.mxu2 %v399_v55  ;;  %v519_v50 = vld [vmem:[#allocation8 + $0x320] sm:$0xff]  ;;  %v542_v52 = vld [vmem:[#allocation8 + $0x3d8] sm:$0xff]  ;;  %v508_v55 = vld [vmem:[#allocation8 + $0x2c8] sm:$0xff] }
  0x5c   :  { %340 = vmatpush.msrb.mxu0 %v216_v53  ;;  %360 = vmatpush.msrb.mxu1 %v248_v54  ;;  %v485_v53 = vld [vmem:[#allocation8 + $0x210] sm:$0xff] }
  0x5d   :  { %461 = vmatpush.msrb.mxu3 %v400_v56  ;;  %442 = vmatpush.msrb.mxu2 %v397_v57  ;;  %v517_v54 = vld [vmem:[#allocation8 + $0x310] sm:$0xff]  ;;  %v540_v56 = vld [vmem:[#allocation8 + $0x3c8] sm:$0xff]  ;;  %v483_v57 = vld [vmem:[#allocation8 + $0x200] sm:$0xff] }
  0x5e   :  { %554 = vmatpush.msra.mxu0 %v513_v2  ;;  %574 = vmatpush.msra.mxu1 %v545_v3  ;;  %v685_v2 = vld [vmem:[#allocation5 + $0x2e8] sm:$0xff]  ;;  %v502_v3 = vld [vmem:[#allocation8 + $0x298] sm:$0xff] }
  0x5f   :  { %462 = vmatpush.msrb.mxu3 %v398_v58  ;;  %443 = vmatpush.msrb.mxu2 %v395_v59  ;;  %v515_v58 = vld [vmem:[#allocation8 + $0x300] sm:$0xff]  ;;  %v506_v59 = vld [vmem:[#allocation8 + $0x2b8] sm:$0xff] }
  0x60   :  { %555 = vmatpush.msra.mxu0 %v511_v4  ;;  %575 = vmatpush.msra.mxu1 %v543_v5  ;;  %v534_v4 = vld [vmem:[#allocation8 + $0x398] sm:$0xff]  ;;  %v682_v5 = vld [vmem:[#allocation5 + $0x2d0] sm:$0xff] }
  0x61   :  { %463 = vmatpush.msrb.mxu3 %v396_v60  ;;  %444 = vmatpush.msrb.mxu2 %v393_v61  ;;  %v538_v60 = vld [vmem:[#allocation8 + $0x3b8] sm:$0xff]  ;;  %v686_v61 = vld [vmem:[#allocation5 + $0x2f0] sm:$0xff] }
  0x62   :  { %556 = vmatpush.msra.mxu0 %v509_v6  ;;  %576 = vmatpush.msra.mxu1 %v541_v7  ;;  %v683_v6 = vld [vmem:[#allocation5 + $0x2d8] sm:$0xff]  ;;  %v500_v7 = vld [vmem:[#allocation8 + $0x288] sm:$0xff] }
  0x63   :  { %464 = vmatpush.msrb.mxu3 %v394_v62  ;;  %445 = vmatpush.msrb.mxu2 %v391_v63  ;;  %v687_v62 = vld [vmem:[#allocation5 + $0x2f8] sm:$0xff]  ;;  %v504_v63 = vld [vmem:[#allocation8 + $0x2a8] sm:$0xff] }
  0x64   :  { %557 = vmatpush.msra.mxu0 %v507_v10  ;;  %577 = vmatpush.msra.mxu1 %v539_v11  ;;  %v681_v10 = vld [vmem:[#allocation5 + $0x2c8] sm:$0xff]  ;;  %v498_v11 = vld [vmem:[#allocation8 + $0x278] sm:$0xff] }
  0x65   :  { %465 = vmatpush.msrb.mxu3 %v392_v0  ;;  %v536_v0 = vld [vmem:[#allocation8 + $0x3a8] sm:$0xff] }
  0x66   :  { %558 = vmatpush.msra.mxu0 %v505_v14  ;;  %578 = vmatpush.msra.mxu1 %v537_v15  ;;  %v679_v14 = vld [vmem:[#allocation5 + $0x2b8] sm:$0xff]  ;;  %v496_v15 = vld [vmem:[#allocation8 + $0x268] sm:$0xff] }
  0x68   :  { %559 = vmatpush.msra.mxu0 %v503_v18  ;;  %579 = vmatpush.msra.mxu1 %v535_v19  ;;  %v677_v18 = vld [vmem:[#allocation5 + $0x2a8] sm:$0xff]  ;;  %v1372_v19 = vmov 0.0  }
  0x69   :  { %122 = vst [vmem:[#allocation13] sm:$0xff] %v1372_v19 }
  0x6a   :  { %560 = vmatpush.msra.mxu0 %v501_v22  ;;  %580 = vmatpush.msra.mxu1 %v533_v23  ;;  %v674_v22 = vld [vmem:[#allocation5 + $0x290] sm:$0xff]  ;;  %123 = vst [vmem:[#allocation13 + $0x8] sm:$0xff] %v1372_v19  ;;  %v675_v23 = vld [vmem:[#allocation5 + $0x298] sm:$0xff] }
  0x6c   :  { %561 = vmatpush.msra.mxu0 %v499_v26  ;;  %581 = vmatpush.msra.mxu1 %v531_v27  ;;  %v672_v26 = vld [vmem:[#allocation5 + $0x280] sm:$0xff]  ;;  %v673_v27 = vld [vmem:[#allocation5 + $0x288] sm:$0xff] }
  0x6e   :  { %562 = vmatpush.msra.mxu0 %v497_v28  ;;  %582 = vmatpush.msra.mxu1 %v529_v29  ;;  %v490_v28 = vld [vmem:[#allocation8 + $0x238] sm:$0xff] }
  0x6f   :  { %v522_v29 = vld [vmem:[#allocation8 + $0x338] sm:$0xff] }
  0x70   :  { %563 = vmatpush.msra.mxu0 %v495_v30  ;;  %583 = vmatpush.msra.mxu1 %v527_v31  ;;  %v670_v30 = vld [vmem:[#allocation5 + $0x270] sm:$0xff]  ;;  %v279_v31 = vld [vmem:[#allocation10] sm:$0x3] }
  0x72   :  { %564 = vmatpush.msra.mxu0 %v493_v32  ;;  %584 = vmatpush.msra.mxu1 %v525_v33  ;;  %v671_v32 = vld [vmem:[#allocation5 + $0x278] sm:$0xff]  ;;  %v488_v33 = vld [vmem:[#allocation8 + $0x228] sm:$0xff] }
  0x74   :  { %565 = vmatpush.msra.mxu0 %v491_v39  ;;  %585 = vmatpush.msra.mxu1 %v523_v40  ;;  %v666_v39 = vld [vmem:[#allocation5 + $0x250] sm:$0xff]  ;;  %v282_v40 = vperm.slane %v279_v31, 1 }
  0x76   :  { %566 = vmatpush.msra.mxu0 %v489_v45  ;;  %586 = vmatpush.msra.mxu1 %v521_v46  ;;  %v665_v45 = vld [vmem:[#allocation5 + $0x248] sm:$0xff] }
  0x78   :  { %567 = vmatpush.msra.mxu0 %v487_v49  ;;  %587 = vmatpush.msra.mxu1 %v519_v50  ;;  %v660_v50 = vld [vmem:[#allocation5 + $0x220] sm:$0xff] }
  0x7a   :  { %568 = vmatpush.msra.mxu0 %v485_v53  ;;  %588 = vmatpush.msra.mxu1 %v517_v54  ;;  %v281_v54 = vperm.slane %v279_v31, 0 }
  0x7c   :  { %569 = vmatpush.msra.mxu0 %v483_v57  ;;  %589 = vmatpush.msra.mxu1 %v515_v58  ;;  %v656_v58 = vld [vmem:[#allocation5 + $0x200] sm:$0xff] }
  0xba   :  { %v180_v12 = vpop.f32.mrf.mxu0  ;;  %v200_v13 = vpop.f32.mrf.mxu1 }
  0xbb   :  { %v181_v16 = vadd.f32 %v180_v12, %v159_v8  ;;  %v201_v17 = vadd.f32 %v200_v13, %v160_v9  ;;  %v532_v8 = vld [vmem:[#allocation8 + $0x388] sm:$0xff]  ;;  %v680_v9 = vld [vmem:[#allocation5 + $0x2c0] sm:$0xff] }
  0xbc   :  { %v530_v12 = vld [vmem:[#allocation8 + $0x378] sm:$0xff]  ;;  %v678_v13 = vld [vmem:[#allocation5 + $0x2b0] sm:$0xff] }
  0xbd   :  { %v205_v20 = vmin.f32 %v181_v16, 0.0  ;;  %v206_v21 = vmin.f32 %v201_v17, 0.0  ;;  %vm203_vm0 = vcmp.gt.f32.partialorder %v181_v16, 0.0  ;;  %vm204_vm1 = vcmp.gt.f32.partialorder %v201_v17, 0.0 }
  0xbf   :  { %v207_v24 = vmul.f32 1.442695, %v205_v20  ;;  %v209_v25 = vmul.f32 1.442695, %v206_v21  ;;  %v494_v20 = vld [vmem:[#allocation8 + $0x258] sm:$0xff] }
  0xc0   :  { %v526_v21 = vld [vmem:[#allocation8 + $0x358] sm:$0xff] }
  0xc1   :  { %1134 = vpow2.f32 %v207_v24  ;;  %v492_v24 = vld [vmem:[#allocation8 + $0x248] sm:$0xff] }
  0xc2   :  { %1136 = vpow2.f32 %v209_v25  ;;  %v524_v25 = vld [vmem:[#allocation8 + $0x348] sm:$0xff] }
  0xc7   :  { %v1135_v34 = vpop.eup %1134 }
  0xc8   :  { %v1137_v35 = vpop.eup %1136  ;;  %v1109_v36 = vadd.f32 -1.0, %v1135_v34  ;;  %v520_v34 = vld [vmem:[#allocation8 + $0x328] sm:$0xff] }
  0xc9   :  { %v1110_v37 = vadd.f32 -1.0, %v1137_v35  ;;  %v668_v35 = vld [vmem:[#allocation5 + $0x260] sm:$0xff] }
  0xca   :  { %v213_v38 = vsel %vm203_vm0, %v181_v16, %v1109_v36  ;;  %v528_v16 = vld [vmem:[#allocation8 + $0x368] sm:$0xff] }
  0xcb   :  { %301 = vmatmul.f32.vlgmr.msra.gmra.mxu2 %v213_v38  ;;  %v214_v41 = vsel %vm204_vm1, %v201_v17, %v1110_v37  ;;  %341 = vmatmul.f32.vlgmr.msrb.gmra.mxu0 %v213_v38  ;;  %v676_v17 = vld [vmem:[#allocation5 + $0x2a0] sm:$0xff]  ;;  %v669_v36 = vld [vmem:[#allocation5 + $0x268] sm:$0xff] }
  0xcc   :  { %321 = vmatmul.f32.vlgmr.msra.gmra.mxu3 %v214_v41  ;;  %361 = vmatmul.f32.vlgmr.msrb.gmra.mxu1 %v214_v41  ;;  %v486_v37 = vld [vmem:[#allocation8 + $0x218] sm:$0xff] }
  0xcd   :  { %594 = vmatpush.msra.mxu2 %v514_v43  ;;  %614 = vmatpush.msra.mxu3 %v546_v44  ;;  %v518_v38 = vld [vmem:[#allocation8 + $0x318] sm:$0xff]  ;;  %v516_v43 = vld [vmem:[#allocation8 + $0x308] sm:$0xff] }
  0xce   :  { %695 = vmatpush.msrb.mxu0 %v686_v61  ;;  %715 = vmatpush.msrb.mxu1 %v687_v62  ;;  %v667_v41 = vld [vmem:[#allocation5 + $0x258] sm:$0xff]  ;;  %v664_v44 = vld [vmem:[#allocation5 + $0x240] sm:$0xff] }
  0xcf   :  { %595 = vmatpush.msra.mxu2 %v512_v47  ;;  %615 = vmatpush.msra.mxu3 %v544_v48  ;;  %v662_v47 = vld [vmem:[#allocation5 + $0x230] sm:$0xff]  ;;  %v663_v48 = vld [vmem:[#allocation5 + $0x238] sm:$0xff] }
  0xd0   :  { %696 = vmatpush.msrb.mxu0 %v684_v1  ;;  %716 = vmatpush.msrb.mxu1 %v685_v2  ;;  %v778_v1 = vld [vmem:[#allocation8 + $0x4f0] sm:$0xff] }
  0xd1   :  { %596 = vmatpush.msra.mxu2 %v510_v51  ;;  %616 = vmatpush.msra.mxu3 %v542_v52  ;;  %v661_v51 = vld [vmem:[#allocation5 + $0x228] sm:$0xff]  ;;  %v810_v2 = vld [vmem:[#allocation8 + $0x5f0] sm:$0xff] }
  0xd2   :  { %697 = vmatpush.msrb.mxu0 %v682_v5  ;;  %717 = vmatpush.msrb.mxu1 %v683_v6  ;;  %v808_v5 = vld [vmem:[#allocation8 + $0x5e0] sm:$0xff]  ;;  %v774_v6 = vld [vmem:[#allocation8 + $0x4d0] sm:$0xff] }
  0xd3   :  { %446 = vmatmul.f32.vlgmr.msrb.gmra.mxu2 %v389_v42  ;;  %617 = vmatpush.msra.mxu3 %v540_v56  ;;  %v659_v56 = vld [vmem:[#allocation5 + $0x218] sm:$0xff] }
  0xd4   :  { %466 = vmatmul.f32.vlgmr.msrb.gmra.mxu3 %v389_v42  ;;  %597 = vmatpush.msra.mxu2 %v508_v55  ;;  %v484_v42 = vld [vmem:[#allocation8 + $0x208] sm:$0xff] }
  0xd5   :  { %618 = vmatpush.msra.mxu3 %v538_v60  ;;  %698 = vmatpush.msrb.mxu0 %v680_v9  ;;  %v658_v55 = vld [vmem:[#allocation5 + $0x210] sm:$0xff] }
  0xd6   :  { %598 = vmatpush.msra.mxu2 %v506_v59  ;;  %718 = vmatpush.msrb.mxu1 %v681_v10  ;;  %v657_v59 = vld [vmem:[#allocation5 + $0x208] sm:$0xff]  ;;  %v806_v9 = vld [vmem:[#allocation8 + $0x5d0] sm:$0xff] }
  0xd7   :  { %619 = vmatpush.msra.mxu3 %v536_v0  ;;  %699 = vmatpush.msrb.mxu0 %v678_v13  ;;  %v424_v0 = vld [vmem:[#allocation7 + $0x2] sm:$0x3] }
  0xd8   :  { %599 = vmatpush.msra.mxu2 %v504_v63  ;;  %719 = vmatpush.msrb.mxu1 %v679_v14  ;;  %v427_v10 = vperm.slane %v424_v0, 1 }
  0xd9   :  { %620 = vmatpush.msra.mxu3 %v534_v4  ;;  %700 = vmatpush.msrb.mxu0 %v676_v17  ;;  %v776_v4 = vld [vmem:[#allocation8 + $0x4e0] sm:$0xff] }
  0xda   :  { %600 = vmatpush.msra.mxu2 %v502_v3  ;;  %720 = vmatpush.msrb.mxu1 %v677_v18 }
  0xdb   :  { %621 = vmatpush.msra.mxu3 %v532_v8  ;;  %701 = vmatpush.msrb.mxu0 %v674_v22  ;;  %v426_v8 = vperm.slane %v424_v0, 0  ;;  %v794_v0 = vld [vmem:[#allocation8 + $0x570] sm:$0xff] }
  0xdc   :  { %601 = vmatpush.msra.mxu2 %v500_v7  ;;  %721 = vmatpush.msrb.mxu1 %v675_v23 }
  0xdd   :  { %622 = vmatpush.msra.mxu3 %v530_v12  ;;  %702 = vmatpush.msrb.mxu0 %v672_v26 }
  0xde   :  { %602 = vmatpush.msra.mxu2 %v498_v11  ;;  %722 = vmatpush.msrb.mxu1 %v673_v27  ;;  %v985_v27 = vld [vmem:[%s1475_s6] sm:$0x3] }
  0xdf   :  { %623 = vmatpush.msra.mxu3 %v528_v16  ;;  %703 = vmatpush.msrb.mxu0 %v670_v30 }
  0xe0   :  { %603 = vmatpush.msra.mxu2 %v496_v15  ;;  %723 = vmatpush.msrb.mxu1 %v671_v32 }
  0xe1   :  { %624 = vmatpush.msra.mxu3 %v526_v21  ;;  %704 = vmatpush.msrb.mxu0 %v668_v35  ;;  %v779_v35 = vld [vmem:[#allocation8 + $0x4f8] sm:$0xff] }
  0xe2   :  { %604 = vmatpush.msra.mxu2 %v494_v20  ;;  %724 = vmatpush.msrb.mxu1 %v669_v36  ;;  %v383_v20 = vlaneseq  ;;  %v811_v36 = vld [vmem:[#allocation8 + $0x5f8] sm:$0xff] }
  0xe3   :  { %625 = vmatpush.msra.mxu3 %v524_v25  ;;  %705 = vmatpush.msrb.mxu0 %v666_v39  ;;  %v809_v39 = vld [vmem:[#allocation8 + $0x5e8] sm:$0xff] }
  0xe4   :  { %605 = vmatpush.msra.mxu2 %v492_v24  ;;  %725 = vmatpush.msrb.mxu1 %v667_v41  ;;  %vm1447_vm5 = vcmp.lt.s32.totalorder %v383_v20, 256  ;;  %v807_v41 = vld [vmem:[#allocation8 + $0x5d8] sm:$0xff]  ;;  %v784_v20 = vld [vmem:[#allocation8 + $0x520] sm:$0xff] }
  0xe5   :  { %626 = vmatpush.msra.mxu3 %v522_v29  ;;  %706 = vmatpush.msrb.mxu0 %v664_v44  ;;  %v804_v44 = vld [vmem:[#allocation8 + $0x5c0] sm:$0xff] }
  0xe6   :  { %606 = vmatpush.msra.mxu2 %v490_v28  ;;  %726 = vmatpush.msrb.mxu1 %v665_v45  ;;  %v773_v45 = vld [vmem:[#allocation8 + $0x4c8] sm:$0xff] }
  0xe7   :  { %627 = vmatpush.msra.mxu3 %v520_v34  ;;  %707 = vmatpush.msrb.mxu0 %v662_v47  ;;  %v770_v47 = vld [vmem:[#allocation8 + $0x4b0] sm:$0xff] }
  0xe8   :  { %607 = vmatpush.msra.mxu2 %v488_v33  ;;  %727 = vmatpush.msrb.mxu1 %v663_v48  ;;  %v802_v48 = vld [vmem:[#allocation8 + $0x5b0] sm:$0xff] }
  0xe9   :  { %628 = vmatpush.msra.mxu3 %v518_v38  ;;  %708 = vmatpush.msrb.mxu0 %v660_v50  ;;  %v777_v38 = vld [vmem:[#allocation8 + $0x4e8] sm:$0xff]  ;;  %v803_v50 = vld [vmem:[#allocation8 + $0x5b8] sm:$0xff] }
  0xea   :  { %608 = vmatpush.msra.mxu2 %v486_v37  ;;  %728 = vmatpush.msrb.mxu1 %v661_v51  ;;  %v768_v51 = vld [vmem:[#allocation8 + $0x4a0] sm:$0xff] }
  0xeb   :  { %629 = vmatpush.msra.mxu3 %v516_v43  ;;  %709 = vmatpush.msrb.mxu0 %v658_v55  ;;  %v772_v43 = vld [vmem:[#allocation8 + $0x4c0] sm:$0xff]  ;;  %v766_v55 = vld [vmem:[#allocation8 + $0x490] sm:$0xff] }
  0xec   :  { %609 = vmatpush.msra.mxu2 %v484_v42  ;;  %729 = vmatpush.msrb.mxu1 %v659_v56  ;;  %v654_v42 = vld [vmem:[#allocation2 + $0x2] sm:$0x1]  ;;  %v798_v56 = vld [vmem:[#allocation8 + $0x590] sm:$0xff] }
  0xed   :  { %710 = vmatpush.msrb.mxu0 %v656_v58  ;;  %839 = vmatpush.msrb.mxu3 %v810_v2  ;;  %v799_v58 = vld [vmem:[#allocation8 + $0x598] sm:$0xff] }
  0xee   :  { %730 = vmatpush.msrb.mxu1 %v657_v59  ;;  %819 = vmatpush.msrb.mxu2 %v778_v1  ;;  %v764_v59 = vld [vmem:[#allocation8 + $0x480] sm:$0xff]  ;;  %v763_v1 = vld [vmem:[#allocation8 + $0x478] sm:$0xff] }
  0xef   :  { %840 = vmatpush.msrb.mxu3 %v808_v5  ;;  %v795_v2 = vld [vmem:[#allocation8 + $0x578] sm:$0xff]  ;;  %v761_v5 = vld [vmem:[#allocation8 + $0x468] sm:$0xff] }
  0xf0   :  { %820 = vmatpush.msrb.mxu2 %v776_v4  ;;  %v792_v4 = vld [vmem:[#allocation8 + $0x560] sm:$0xff] }
  0xf1   :  { %841 = vmatpush.msrb.mxu3 %v806_v9  ;;  %v759_v9 = vld [vmem:[#allocation8 + $0x458] sm:$0xff] }
  0xf2   :  { %821 = vmatpush.msrb.mxu2 %v774_v6  ;;  %v793_v6 = vld [vmem:[#allocation8 + $0x568] sm:$0xff] }
  0xf3   :  { %842 = vmatpush.msrb.mxu3 %v804_v44 }
  0xf4   :  { %822 = vmatpush.msrb.mxu2 %v772_v43 }
  0xf5   :  { %843 = vmatpush.msrb.mxu3 %v802_v48 }
  0xf6   :  { %823 = vmatpush.msrb.mxu2 %v770_v47 }
  0xf8   :  { %824 = vmatpush.msrb.mxu2 %v768_v51 }
  0xfa   :  { %825 = vmatpush.msrb.mxu2 %v766_v55 }
  0xfc   :  { %826 = vmatpush.msrb.mxu2 %v764_v59 }
 0x148   :  { %v342_v46 = vpop.f32.mrf.mxu0 }
 0x149   :  { %v343_v49 = vadd.f32 %v342_v46, %v282_v40  ;;  %v362_v52 = vpop.f32.mrf.mxu1  ;;  %v775_v40 = vld [vmem:[#allocation8 + $0x4d8] sm:$0xff]  ;;  %v805_v46 = vld [vmem:[#allocation8 + $0x5c8] sm:$0xff] }
 0x14b   :  { %v363_v53 = vadd.f32 %v362_v52, %v343_v49  ;;  %v771_v49 = vld [vmem:[#allocation8 + $0x4b8] sm:$0xff]  ;;  %v800_v52 = vld [vmem:[#allocation8 + $0x5a0] sm:$0xff] }
 0x14c   :  { %844 = vmatpush.msrb.mxu3 %v800_v52 }
 0x14d   :  { %v368_v57 = vmin.f32 %v363_v53, 0.0  ;;  %vm366_vm2 = vcmp.gt.f32.partialorder %v363_v53, 0.0 }
 0x14e   :  { %v302_v60 = vpop.f32.mrf.mxu2  ;;  %845 = vmatpush.msrb.mxu3 %v798_v56 }
 0x14f   :  { %v371_v61 = vmul.f32 1.442695, %v368_v57  ;;  %v303_v62 = vadd.f32 %v302_v60, %v281_v54  ;;  %v322_v63 = vpop.f32.mrf.mxu3  ;;  %v801_v54 = vld [vmem:[#allocation8 + $0x5a8] sm:$0xff]  ;;  %v767_v57 = vld [vmem:[#allocation8 + $0x498] sm:$0xff]  ;;  %v796_v60 = vld [vmem:[#allocation8 + $0x580] sm:$0xff] }
 0x150   :  { %846 = vmatpush.msrb.mxu3 %v796_v60 }
 0x151   :  { %1138 = vpow2.f32 %v371_v61  ;;  %v323_v3 = vadd.f32 %v322_v63, %v303_v62  ;;  %v765_v61 = vld [vmem:[#allocation8 + $0x488] sm:$0xff]  ;;  %v762_v63 = vld [vmem:[#allocation8 + $0x470] sm:$0xff] }
 0x152   :  { %v797_v62 = vld [vmem:[#allocation8 + $0x588] sm:$0xff]  ;;  %827 = vmatpush.msrb.mxu2 %v762_v63  ;;  %847 = vmatpush.msrb.mxu3 %v794_v0 }
 0x153   :  { %v367_v7 = vmin.f32 %v323_v3, 0.0  ;;  %vm365_vm4 = vcmp.gt.f32.partialorder %v323_v3, 0.0 }
 0x154   :  { %848 = vmatpush.msrb.mxu3 %v792_v4 }
 0x155   :  { %v369_v11 = vmul.f32 1.442695, %v367_v7  ;;  %v758_v7 = vld [vmem:[#allocation8 + $0x450] sm:$0xff] }
 0x156   :  { %v447_v12 = vpop.f32.mrf.mxu2 }
 0x157   :  { %v1139_v13 = vpop.eup %1138  ;;  %1140 = vpow2.f32 %v369_v11  ;;  %v448_v14 = vadd.f32 %v447_v12, %v426_v8  ;;  %v467_v15 = vpop.f32.mrf.mxu3  ;;  %v790_v8 = vld [vmem:[#allocation8 + $0x550] sm:$0xff]  ;;  %v756_v11 = vld [vmem:[#allocation8 + $0x440] sm:$0xff] }
 0x158   :  { %v1112_v16 = vadd.f32 -1.0, %v1139_v13  ;;  %v468_v17 = vadd.f32 %v467_v15, %v427_v10  ;;  %849 = vmatpush.msrb.mxu3 %v790_v8  ;;  %v791_v10 = vld [vmem:[#allocation8 + $0x558] sm:$0xff]  ;;  %v788_v12 = vld [vmem:[#allocation8 + $0x540] sm:$0xff]  ;;  %v757_v13 = vld [vmem:[#allocation8 + $0x448] sm:$0xff] }
 0x159   :  { %v472_v18 = vmin.f32 %v448_v14, 0.0  ;;  %vm470_vm6 = vcmp.gt.f32.partialorder %v448_v14, 0.0  ;;  %v754_v15 = vld [vmem:[#allocation8 + $0x430] sm:$0xff] }
 0x15a   :  { %v473_v19 = vmin.f32 %v468_v17, 0.0  ;;  %v376_v22 = vsel %vm366_vm2, %v363_v53, %v1112_v16  ;;  %vm471_vm7 = vcmp.gt.f32.partialorder %v468_v17, 0.0  ;;  %v769_v53 = vld [vmem:[#allocation8 + $0x4a8] sm:$0xff]  ;;  %850 = vmatpush.msrb.mxu3 %v788_v12  ;;  %v786_v16 = vld [vmem:[#allocation8 + $0x530] sm:$0xff] }
 0x15b   :  { %v474_v21 = vmul.f32 1.442695, %v472_v18  ;;  %v379_v26 = vrot.slane %v376_v22, 7  ;;  %v787_v18 = vld [vmem:[#allocation8 + $0x538] sm:$0xff]  ;;  %v785_v22 = vld [vmem:[#allocation8 + $0x528] sm:$0xff] }
 0x15c   :  { %v476_v23 = vmul.f32 1.442695, %v473_v19  ;;  %851 = vmatpush.msrb.mxu3 %v786_v16  ;;  %v752_v19 = vld [vmem:[#allocation8 + $0x420] sm:$0xff]  ;;  %v951_v8 = vld [vmem:[#allocation11 + $0xf0] sm:$0xff] }
 0x15d   :  { %v1141_v24 = vpop.eup %1140  ;;  %1142 = vpow2.f32 %v474_v21  ;;  %v753_v21 = vld [vmem:[#allocation8 + $0x428] sm:$0xff]  ;;  %v947_v16 = vld [vmem:[#allocation11 + $0xd0] sm:$0xff] }
 0x15e   :  { %v1111_v25 = vadd.f32 -1.0, %v1141_v24  ;;  %1144 = vpow2.f32 %v476_v23  ;;  %852 = vmatpush.msrb.mxu3 %v784_v20  ;;  %v750_v23 = vld [vmem:[#allocation8 + $0x410] sm:$0xff]  ;;  %v949_v12 = vld [vmem:[#allocation11 + $0xe0] sm:$0xff] }
 0x15f   :  { %v782_v24 = vld [vmem:[#allocation8 + $0x510] sm:$0xff]  ;;  %v945_v20 = vld [vmem:[#allocation11 + $0xc0] sm:$0xff] }
 0x160   :  { %v375_v28 = vsel %vm365_vm4, %v323_v3, %v1111_v25  ;;  %v760_v3 = vld [vmem:[#allocation8 + $0x460] sm:$0xff]  ;;  %v751_v25 = vld [vmem:[#allocation8 + $0x418] sm:$0xff]  ;;  %853 = vmatpush.msrb.mxu3 %v782_v24 }
 0x161   :  { %v381_v29 = vsel %vm380_vm3, %v375_v28, %v379_v26  ;;  %828 = vmatpush.msrb.mxu2 %v760_v3  ;;  %v783_v26 = vld [vmem:[#allocation8 + $0x518] sm:$0xff]  ;;  %v748_v28 = vld [vmem:[#allocation8 + $0x400] sm:$0xff] }
 0x162   :  { %387 = vst.msk [vmem:[#allocation13] ss:$8 sm:$0x3] %vm1447_vm5, %v381_v29  ;;  %v780_v29 = vld [vmem:[#allocation8 + $0x500] sm:$0xff]  ;;  %v943_v24 = vld [vmem:[#allocation11 + $0xb0] sm:$0xff] }
 0x163   :  { %v1143_v30 = vpop.eup %1142  ;;  %829 = vmatpush.msrb.mxu2 %v758_v7  ;;  %854 = vmatpush.msrb.mxu3 %v780_v29  ;;  %v941_v29 = vld [vmem:[#allocation11 + $0xa0] sm:$0xff] }
 0x164   :  { %v1145_v31 = vpop.eup %1144  ;;  %v1113_v32 = vadd.f32 -1.0, %v1143_v30  ;;  %v749_v30 = vld [vmem:[#allocation8 + $0x408] sm:$0xff] }
 0x165   :  { %v1114_v33 = vadd.f32 -1.0, %v1145_v31  ;;  %830 = vmatpush.msrb.mxu2 %v756_v11  ;;  %v548_v31 = vld [vmem:[#allocation10 + $0x2] sm:$0x3] }
 0x166   :  { %v480_v34 = vsel %vm470_vm6, %v448_v14, %v1113_v32  ;;  %v789_v14 = vld [vmem:[#allocation8 + $0x548] sm:$0xff]  ;;  %v984_v11 = vld [vmem:[#allocation11 + $0x1f8] sm:$0xff] }
 0x167   :  { %570 = vmatmul.f32.vlgmr.msra.gmra.mxu0 %v480_v34  ;;  %v481_v37 = vsel %vm471_vm7, %v468_v17, %v1114_v33  ;;  %610 = vmatmul.f32.vlgmr.msra.gmra.mxu2 %v480_v34  ;;  %v755_v17 = vld [vmem:[#allocation8 + $0x438] sm:$0xff]  ;;  %v781_v32 = vld [vmem:[#allocation8 + $0x508] sm:$0xff]  ;;  %v550_v33 = vperm.slane %v548_v31, 0 }
 0x168   :  { %590 = vmatmul.f32.vlgmr.msra.gmra.mxu1 %v481_v37  ;;  %630 = vmatmul.f32.vlgmr.msra.gmra.mxu3 %v481_v37  ;;  %v689_v37 = vld [vmem:[#allocation7 + $0x4] sm:$0x3] }
 0x169   :  { %859 = vmatpush.msra.mxu0 %v779_v35  ;;  %879 = vmatpush.msra.mxu1 %v811_v36  ;;  %v692_v43 = vperm.slane %v689_v37, 1 }
 0x16a   :  { %831 = vmatpush.msrb.mxu2 %v754_v15  ;;  %v982_v15 = vld [vmem:[#allocation11 + $0x1e8] sm:$0xff] }
 0x16b   :  { %860 = vmatpush.msra.mxu0 %v777_v38  ;;  %880 = vmatpush.msra.mxu1 %v809_v39  ;;  %v551_v39 = vperm.slane %v548_v31, 1  ;;  %v942_v31 = vld [vmem:[#allocation11 + $0xa8] sm:$0xff] }
 0x16c   :  { %832 = vmatpush.msrb.mxu2 %v752_v19  ;;  %v980_v19 = vld [vmem:[#allocation11 + $0x1d8] sm:$0xff] }
 0x16d   :  { %861 = vmatpush.msra.mxu0 %v775_v40  ;;  %881 = vmatpush.msra.mxu1 %v807_v41  ;;  %v691_v41 = vperm.slane %v689_v37, 0  ;;  %v937_v37 = vld [vmem:[#allocation11 + $0x80] sm:$0xff] }
 0x16e   :  { %833 = vmatpush.msrb.mxu2 %v750_v23  ;;  %v978_v23 = vld [vmem:[#allocation11 + $0x1c8] sm:$0xff] }
 0x16f   :  { %711 = vmatmul.f32.vlgmr.msrb.gmra.mxu0 %v654_v42  ;;  %882 = vmatpush.msra.mxu1 %v805_v46 }
 0x170   :  { %731 = vmatmul.f32.vlgmr.msrb.gmra.mxu1 %v654_v42  ;;  %862 = vmatpush.msra.mxu0 %v773_v45 }
 0x171   :  { %883 = vmatpush.msra.mxu1 %v803_v50  ;;  %834 = vmatpush.msrb.mxu2 %v748_v28  ;;  %v976_v28 = vld [vmem:[#allocation11 + $0x1b8] sm:$0xff] }
 0x172   :  { %863 = vmatpush.msra.mxu0 %v771_v49 }
 0x173   :  { %884 = vmatpush.msra.mxu1 %v801_v54  ;;  %991 = vmatpush.msra.mxu2 %v951_v8  ;;  %v953_v8 = vld [vmem:[#allocation11 + $0x100] sm:$0xff] }
 0x174   :  { %864 = vmatpush.msra.mxu0 %v769_v53 }
 0x175   :  { %885 = vmatpush.msra.mxu1 %v799_v58  ;;  %992 = vmatpush.msra.mxu2 %v949_v12 }
 0x176   :  { %865 = vmatpush.msra.mxu0 %v767_v57 }
 0x177   :  { %886 = vmatpush.msra.mxu1 %v797_v62  ;;  %993 = vmatpush.msra.mxu2 %v947_v16 }
 0x178   :  { %866 = vmatpush.msra.mxu0 %v765_v61 }
 0x179   :  { %887 = vmatpush.msra.mxu1 %v795_v2  ;;  %994 = vmatpush.msra.mxu2 %v945_v20 }
 0x17a   :  { %867 = vmatpush.msra.mxu0 %v763_v1 }
 0x17b   :  { %888 = vmatpush.msra.mxu1 %v793_v6  ;;  %995 = vmatpush.msra.mxu2 %v943_v24 }
 0x17c   :  { %868 = vmatpush.msra.mxu0 %v761_v5 }
 0x17d   :  { %889 = vmatpush.msra.mxu1 %v791_v10  ;;  %v952_v10 = vld [vmem:[#allocation11 + $0xf8] sm:$0xff]  ;;  %996 = vmatpush.msra.mxu2 %v941_v29 }
 0x17e   :  { %869 = vmatpush.msra.mxu0 %v759_v9  ;;  %v983_v9 = vld [vmem:[#allocation11 + $0x1f0] sm:$0xff] }
 0x17f   :  { %890 = vmatpush.msra.mxu1 %v789_v14  ;;  %1011 = vmatpush.msra.mxu3 %v983_v9  ;;  %v950_v14 = vld [vmem:[#allocation11 + $0xe8] sm:$0xff] }
 0x180   :  { %870 = vmatpush.msra.mxu0 %v757_v13  ;;  %v981_v13 = vld [vmem:[#allocation11 + $0x1e0] sm:$0xff] }
 0x181   :  { %891 = vmatpush.msra.mxu1 %v787_v18  ;;  %1012 = vmatpush.msra.mxu3 %v981_v13  ;;  %v948_v18 = vld [vmem:[#allocation11 + $0xd8] sm:$0xff] }
 0x182   :  { %871 = vmatpush.msra.mxu0 %v755_v17  ;;  %v979_v17 = vld [vmem:[#allocation11 + $0x1d0] sm:$0xff] }
 0x183   :  { %892 = vmatpush.msra.mxu1 %v785_v22  ;;  %1013 = vmatpush.msra.mxu3 %v979_v17  ;;  %v946_v22 = vld [vmem:[#allocation11 + $0xc8] sm:$0xff] }
 0x184   :  { %872 = vmatpush.msra.mxu0 %v753_v21  ;;  %v977_v21 = vld [vmem:[#allocation11 + $0x1c0] sm:$0xff] }
 0x185   :  { %893 = vmatpush.msra.mxu1 %v783_v26  ;;  %1014 = vmatpush.msra.mxu3 %v977_v21  ;;  %v944_v26 = vld [vmem:[#allocation11 + $0xb8] sm:$0xff] }
 0x186   :  { %873 = vmatpush.msra.mxu0 %v751_v25  ;;  %v975_v25 = vld [vmem:[#allocation11 + $0x1b0] sm:$0xff] }
 0x187   :  { %894 = vmatpush.msra.mxu1 %v781_v32  ;;  %1015 = vmatpush.msra.mxu3 %v975_v25  ;;  %v974_v32 = vld [vmem:[#allocation11 + $0x1a8] sm:$0xff] }
 0x188   :  { %874 = vmatpush.msra.mxu0 %v749_v30  ;;  %v973_v30 = vld [vmem:[#allocation11 + $0x1a0] sm:$0xff] }
 0x189   :  { %1051 = vmatpush.msrb.mxu1 %v984_v11  ;;  %1016 = vmatpush.msra.mxu3 %v973_v30  ;;  %v954_v11 = vld [vmem:[#allocation11 + $0x108] sm:$0xff] }
 0x18a   :  { %1031 = vmatpush.msrb.mxu0 %v952_v10  ;;  %v922_v10 = vld [vmem:[#allocation11 + $0x8] sm:$0xff] }
 0x18b   :  { %1052 = vmatpush.msrb.mxu1 %v982_v15 }
 0x18c   :  { %1032 = vmatpush.msrb.mxu0 %v950_v14 }
 0x18d   :  { %1053 = vmatpush.msrb.mxu1 %v980_v19 }
 0x18e   :  { %1033 = vmatpush.msrb.mxu0 %v948_v18 }
 0x18f   :  { %1054 = vmatpush.msrb.mxu1 %v978_v23 }
 0x190   :  { %1034 = vmatpush.msrb.mxu0 %v946_v22 }
 0x191   :  { %1055 = vmatpush.msrb.mxu1 %v976_v28 }
 0x192   :  { %1035 = vmatpush.msrb.mxu0 %v944_v26 }
 0x193   :  { %1056 = vmatpush.msrb.mxu1 %v974_v32 }
 0x194   :  { %1036 = vmatpush.msrb.mxu0 %v942_v31 }
 0x1e4   :  { %v571_v34 = vpop.f32.mrf.mxu0 }
 0x1e5   :  { %v572_v35 = vadd.f32 %v571_v34, %v550_v33  ;;  %v591_v36 = vpop.f32.mrf.mxu1  ;;  %v939_v33 = vld [vmem:[#allocation11 + $0x90] sm:$0xff] }
 0x1e6   :  { %v971_v34 = vld [vmem:[#allocation11 + $0x190] sm:$0xff]  ;;  %997 = vmatpush.msra.mxu2 %v939_v33 }
 0x1e7   :  { %v592_v38 = vadd.f32 %v591_v36, %v572_v35  ;;  %v940_v35 = vld [vmem:[#allocation11 + $0x98] sm:$0xff]  ;;  %1017 = vmatpush.msra.mxu3 %v971_v34 }
 0x1e8   :  { %v972_v36 = vld [vmem:[#allocation11 + $0x198] sm:$0xff]  ;;  %1037 = vmatpush.msrb.mxu0 %v940_v35  ;;  %998 = vmatpush.msra.mxu2 %v937_v37  ;;  %v988_v35 = vperm.slane %v985_v27, 1 }
 0x1e9   :  { %v636_v40 = vmin.f32 %v592_v38, 0.0  ;;  %vm634_vm10 = vcmp.gt.f32.partialorder %v592_v38, 0.0  ;;  %1057 = vmatpush.msrb.mxu1 %v972_v36 }
 0x1ea   :  { %v611_v42 = vpop.f32.mrf.mxu2 }
 0x1eb   :  { %v612_v44 = vadd.f32 %v611_v42, %v551_v39  ;;  %v631_v45 = vpop.f32.mrf.mxu3  ;;  %v638_v47 = vmul.f32 1.442695, %v636_v40  ;;  %v938_v39 = vld [vmem:[#allocation11 + $0x88] sm:$0xff]  ;;  %v967_v42 = vld [vmem:[#allocation11 + $0x170] sm:$0xff] }
 0x1ec   :  { %v712_v46 = vpop.f32.mrf.mxu0  ;;  %v970_v40 = vld [vmem:[#allocation11 + $0x188] sm:$0xff]  ;;  %1038 = vmatpush.msrb.mxu0 %v938_v39  ;;  %v987_v39 = vperm.slane %v985_v27, 0 }
 0x1ed   :  { %v632_v48 = vadd.f32 %v631_v45, %v612_v44  ;;  %v713_v49 = vadd.f32 %v712_v46, %v691_v41  ;;  %v732_v50 = vpop.f32.mrf.mxu1  ;;  %1146 = vpow2.f32 %v638_v47  ;;  %1058 = vmatpush.msrb.mxu1 %v970_v40  ;;  %v935_v41 = vld [vmem:[#allocation11 + $0x70] sm:$0xff]  ;;  %v968_v44 = vld [vmem:[#allocation11 + $0x178] sm:$0xff]  ;;  %v933_v45 = vld [vmem:[#allocation11 + $0x60] sm:$0xff] }
 0x1ee   :  { %v733_v51 = vadd.f32 %v732_v50, %v692_v43  ;;  %v936_v43 = vld [vmem:[#allocation11 + $0x78] sm:$0xff]  ;;  %999 = vmatpush.msra.mxu2 %v935_v41  ;;  %v965_v46 = vld [vmem:[#allocation11 + $0x160] sm:$0xff]  ;;  %v934_v47 = vld [vmem:[#allocation11 + $0x68] sm:$0xff] }
 0x1ef   :  { %v637_v52 = vmin.f32 %v632_v48, 0.0  ;;  %v737_v53 = vmin.f32 %v713_v49, 0.0  ;;  %vm635_vm8 = vcmp.gt.f32.partialorder %v632_v48, 0.0  ;;  %vm735_vm9 = vcmp.gt.f32.partialorder %v713_v49, 0.0  ;;  %1039 = vmatpush.msrb.mxu0 %v936_v43  ;;  %1059 = vmatpush.msrb.mxu1 %v968_v44  ;;  %v963_v50 = vld [vmem:[#allocation11 + $0x150] sm:$0xff] }
 0x1f0   :  { %v738_v54 = vmin.f32 %v733_v51, 0.0  ;;  %vm736_vm11 = vcmp.gt.f32.partialorder %v733_v51, 0.0  ;;  %1000 = vmatpush.msra.mxu2 %v933_v45 }
 0x1f1   :  { %v640_v55 = vmul.f32 1.442695, %v637_v52  ;;  %v739_v56 = vmul.f32 1.442695, %v737_v53  ;;  %1040 = vmatpush.msrb.mxu0 %v934_v47  ;;  %v813_v52 = vld [vmem:[#allocation10 + $0x4] sm:$0x3] }
 0x1f2   :  { %v741_v57 = vmul.f32 1.442695, %v738_v54  ;;  %v964_v53 = vld [vmem:[#allocation11 + $0x158] sm:$0xff]  ;;  %v929_v54 = vld [vmem:[#allocation11 + $0x40] sm:$0xff]  ;;  %v815_v15 = vperm.slane %v813_v52, 0 }
 0x1f3   :  { %1148 = vpow2.f32 %v640_v55  ;;  %v1147_v58 = vpop.eup %1146  ;;  %v961_v55 = vld [vmem:[#allocation11 + $0x140] sm:$0xff] }
 0x1f4   :  { %1150 = vpow2.f32 %v739_v56  ;;  %v1115_v61 = vadd.f32 -1.0, %v1147_v58  ;;  %v930_v56 = vld [vmem:[#allocation11 + $0x48] sm:$0xff]  ;;  %v927_v58 = vld [vmem:[#allocation11 + $0x30] sm:$0xff] }
 0x1f5   :  { %1152 = vpow2.f32 %v741_v57  ;;  %v962_v57 = vld [vmem:[#allocation11 + $0x148] sm:$0xff] }
 0x1f6   :  { %v644_v5 = vsel %vm634_vm10, %v592_v38, %v1115_v61  ;;  %v969_v38 = vld [vmem:[#allocation11 + $0x180] sm:$0xff]  ;;  %v960_v61 = vld [vmem:[#allocation11 + $0x138] sm:$0xff] }
 0x1f7   :  { %1018 = vmatpush.msra.mxu3 %v969_v38 }
 0x1f9   :  { %v1149_v59 = vpop.eup %1148  ;;  %1019 = vmatpush.msra.mxu3 %v967_v42 }
 0x1fa   :  { %v1151_v60 = vpop.eup %1150  ;;  %v1116_v62 = vadd.f32 -1.0, %v1149_v59  ;;  %v959_v59 = vld [vmem:[#allocation11 + $0x130] sm:$0xff] }
 0x1fb   :  { %v1153_v63 = vpop.eup %1152  ;;  %v1117_v0 = vadd.f32 -1.0, %v1151_v60  ;;  %1020 = vmatpush.msra.mxu3 %v965_v46  ;;  %v928_v60 = vld [vmem:[#allocation11 + $0x38] sm:$0xff] }
 0x1fc   :  { %v645_v1 = vsel %vm635_vm8, %v632_v48, %v1116_v62  ;;  %v1118_v2 = vadd.f32 -1.0, %v1153_v63  ;;  %v966_v48 = vld [vmem:[#allocation11 + $0x168] sm:$0xff]  ;;  %v925_v62 = vld [vmem:[#allocation11 + $0x20] sm:$0xff] }
 0x1fd   :  { %v648_v3 = vrot.slane %v645_v1, 7  ;;  %v745_v4 = vsel %vm735_vm9, %v713_v49, %v1117_v0  ;;  %1060 = vmatpush.msrb.mxu1 %v966_v48  ;;  %v931_v49 = vld [vmem:[#allocation11 + $0x50] sm:$0xff]  ;;  %1021 = vmatpush.msra.mxu3 %v963_v50  ;;  %v957_v63 = vld [vmem:[#allocation11 + $0x120] sm:$0xff]  ;;  %v926_v0 = vld [vmem:[#allocation11 + $0x28] sm:$0xff] }
 0x1fe   :  { %835 = vmatmul.f32.vlgmr.msrb.gmra.mxu2 %v745_v4  ;;  %v746_v6 = vsel %vm736_vm11, %v733_v51, %v1118_v2  ;;  %875 = vmatmul.f32.vlgmr.msra.gmra.mxu0 %v745_v4  ;;  %v932_v51 = vld [vmem:[#allocation11 + $0x58] sm:$0xff]  ;;  %v958_v1 = vld [vmem:[#allocation11 + $0x128] sm:$0xff]  ;;  %v816_v2 = vperm.slane %v813_v52, 1  ;;  %v955_v4 = vld [vmem:[#allocation11 + $0x110] sm:$0xff] }
 0x1ff   :  { %v649_v7 = vsel %vm380_vm3, %v644_v5, %v648_v3  ;;  %855 = vmatmul.f32.vlgmr.msrb.gmra.mxu3 %v746_v6  ;;  %895 = vmatmul.f32.vlgmr.msra.gmra.mxu1 %v746_v6  ;;  %v923_v3 = vld [vmem:[#allocation11 + $0x10] sm:$0xff]  ;;  %v924_v5 = vld [vmem:[#allocation11 + $0x18] sm:$0xff] }
 0x200   :  { %652 = vst.msk [vmem:[#allocation13 + $0x1] ss:$8 sm:$0x3] %vm1447_vm5, %v649_v7  ;;  %1001 = vmatpush.msra.mxu2 %v931_v49  ;;  %1041 = vmatpush.msrb.mxu0 %v932_v51  ;;  %v956_v6 = vld [vmem:[#allocation11 + $0x118] sm:$0xff]  ;;  %v921_v7 = vld [vmem:[#allocation11] sm:$0xff] }
 0x201   :  { %1061 = vmatpush.msrb.mxu1 %v964_v53  ;;  %1022 = vmatpush.msra.mxu3 %v961_v55 }
 0x202   :  { %1002 = vmatpush.msra.mxu2 %v929_v54  ;;  %1042 = vmatpush.msrb.mxu0 %v930_v56 }
 0x203   :  { %1062 = vmatpush.msrb.mxu1 %v962_v57  ;;  %1023 = vmatpush.msra.mxu3 %v959_v59 }
 0x204   :  { %1003 = vmatpush.msra.mxu2 %v927_v58  ;;  %1043 = vmatpush.msrb.mxu0 %v928_v60 }
 0x205   :  { %1063 = vmatpush.msrb.mxu1 %v960_v61  ;;  %1024 = vmatpush.msra.mxu3 %v957_v63 }
 0x206   :  { %1004 = vmatpush.msra.mxu2 %v925_v62  ;;  %1044 = vmatpush.msrb.mxu0 %v926_v0 }
 0x207   :  { %1064 = vmatpush.msrb.mxu1 %v958_v1  ;;  %1025 = vmatpush.msra.mxu3 %v955_v4 }
 0x208   :  { %1005 = vmatpush.msra.mxu2 %v923_v3  ;;  %1045 = vmatpush.msrb.mxu0 %v924_v5 }
 0x209   :  { %1065 = vmatpush.msrb.mxu1 %v956_v6  ;;  %1026 = vmatpush.msra.mxu3 %v953_v8 }
 0x20a   :  { %1006 = vmatpush.msra.mxu2 %v921_v7  ;;  %1046 = vmatpush.msrb.mxu0 %v922_v10 }
 0x20b   :  { %1066 = vmatpush.msrb.mxu1 %v954_v11 }
 0x27b   :  { %v876_v9 = vpop.f32.mrf.mxu0 }
 0x27c   :  { %v877_v12 = vadd.f32 %v876_v9, %v816_v2  ;;  %v896_v13 = vpop.f32.mrf.mxu1 }
 0x27e   :  { %v897_v14 = vadd.f32 %v896_v13, %v877_v12 }
 0x280   :  { %v902_v16 = vmin.f32 %v897_v14, 0.0  ;;  %vm900_vm12 = vcmp.gt.f32.partialorder %v897_v14, 0.0 }
 0x281   :  { %v836_v17 = vpop.f32.mrf.mxu2 }
 0x282   :  { %v905_v18 = vmul.f32 1.442695, %v902_v16  ;;  %v837_v19 = vadd.f32 %v836_v17, %v815_v15  ;;  %v856_v20 = vpop.f32.mrf.mxu3 }
 0x284   :  { %1154 = vpow2.f32 %v905_v18  ;;  %v857_v21 = vadd.f32 %v856_v20, %v837_v19 }
 0x286   :  { %v901_v22 = vmin.f32 %v857_v21, 0.0  ;;  %vm899_vm13 = vcmp.gt.f32.partialorder %v857_v21, 0.0 }
 0x288   :  { %v903_v23 = vmul.f32 1.442695, %v901_v22 }
 0x28a   :  { %v1155_v24 = vpop.eup %1154  ;;  %1156 = vpow2.f32 %v903_v23 }
 0x28b   :  { %v1120_v25 = vadd.f32 -1.0, %v1155_v24 }
 0x28d   :  { %v910_v26 = vsel %vm900_vm12, %v897_v14, %v1120_v25 }
 0x28e   :  { %v913_v30 = vrot.slane %v910_v26, 7 }
 0x290   :  { %v1157_v28 = vpop.eup %1156 }
 0x291   :  { %v1119_v29 = vadd.f32 -1.0, %v1157_v28 }
 0x293   :  { %v909_v31 = vsel %vm899_vm13, %v857_v21, %v1119_v29 }
 0x294   :  { %v914_v32 = vsel %vm380_vm3, %v909_v31, %v913_v30 }
 0x295   :  { %917 = vst.msk [vmem:[#allocation13 + $0x2] ss:$8 sm:$0x3] %vm1447_vm5, %v914_v32 }
 0x296   :  { %1083 = dma.vmem_to_hbm [thread:$0]  %s1079_s5, 256, %s1081_s15, [#allocation4]  }
 0x29c   :  { %v919_v33 = vld [vmem:[#allocation13] sm:$0xff]  ;;  %v920_v34 = vld [vmem:[#allocation13 + $0x8] sm:$0xff] }
 0x29d   :  { %1007 = vmatmul.f32.vlgmr.msra.gmra.mxu2 %v919_v33  ;;  %1027 = vmatmul.f32.vlgmr.msra.gmra.mxu3 %v920_v34 }
 0x29e   :  { %1047 = vmatmul.f32.vlgmr.msrb.gmra.mxu0 %v919_v33  ;;  %1067 = vmatmul.f32.vlgmr.msrb.gmra.mxu1 %v920_v34 }
 0x31b   :  { %v1048_v36 = vpop.f32.mrf.mxu0  ;;  %v1068_v38 = vpop.f32.mrf.mxu1 }
 0x31c   :  { %v1049_v37 = vadd.f32 %v1048_v36, %v988_v35 }
 0x31e   :  { %v1069_v40 = vadd.f32 %v1068_v38, %v1049_v37 }
 0x320   :  { %1072 = vst [vmem:[#allocation14 + $0x8] sm:$0xff] %v1069_v40  ;;  %v1008_v41 = vpop.f32.mrf.mxu2  ;;  %v1028_v43 = vpop.f32.mrf.mxu3 }
 0x321   :  { %v1009_v42 = vadd.f32 %v1008_v41, %v987_v39 }
 0x323   :  { %v1029_v44 = vadd.f32 %v1028_v43, %v1009_v42 }
 0x325   :  { %1071 = vst [vmem:[#allocation14] sm:$0xff] %v1029_v44 }
 0x326   :  { %1094 = dma.vmem_to_hbm [thread:$0]  %s1090_s18, 256, %s1092_s7, [#allocation15]  }
 0x327   :  { %1358 = dma.done.wait [#allocation4], 256  }
 0x328   :  { %1359 = vsyncadd [#allocation4], 4294967040 }
 0x329   :  { %1360 = dma.done.wait [#allocation15], 256  }
 0x32a   :  { %1361 = vsyncadd [#allocation15], 4294967040 }
 0x32b   :  { %1103 = vsyncpa [#allocation3], 1 }
 0x32c   :  { %1104 = vsyncpa [#allocation6], 1 }
 0x32d   :  { %1105 = vsyncpa [#allocation9], 1 }
 0x32e   :  { %1106 = vsyncpa [#allocation12], 1 }
 0x32f   :  { %1107 = vsyncpa [#allocation4], 1 }
 0x330   :  { %1108 = vsyncpa [#allocation15], 1 }

</bundles_post_ra>
